<compile_context>
chip_gen: v6e
topology: v6e:2x2x1
jax: 0.10.0
libtpu: 0.0.40
codegen_flags: <defaults>
</compile_context>

<pallas_src>
import functools

import jax
import jax.numpy as jnp
from jax.experimental import pallas as pl
from jax.experimental.pallas import tpu as pltpu


# Rows of the per-layer vector slab (each row is a length-D vector).
_BQ, _BK, _BV, _BOUT, _G1, _BE1, _BA1, _BA2, _G2, _BE2 = range(10)
_N_VEC_ROWS = 10


# ----------------------------------------------------------------------------
# Kernel: one grid step == one decoder layer (PE add at l==0, readout at last)
# ----------------------------------------------------------------------------
def fused_decoder_kernel(x_emb_ref, pe_ref, w_ro_ref, b_ro_ref,
                         wqkv_ref, wmisc_ref, vec_ref,
                         o_ref, x_scr,
                         *, batch, seq, dim, nheads, num_layers):
    B, T, D, H = batch, seq, dim, nheads
    BT = B * T
    dh = D // H
    scale = 1.0 / (dh ** 0.5)
    l = pl.program_id(0)

    # ---- layer 0: embeddings + positional encodings into the resident scratch
    @pl.when(l == 0)
    def _init():
        x0 = x_emb_ref[...].reshape(B, T, D) + pe_ref[...][None]
        x_scr[...] = x0.reshape(BT, D)

    x = x_scr[...]                                               # [BT, D]

    # ---- this layer's parameters (streamed slab slices)
    wqkv = wqkv_ref[0]                                           # [D, 3D]
    wm = wmisc_ref[0]                                            # [3, D, D]
    wout, wa1, wa2 = wm[0], wm[1], wm[2]
    vec = vec_ref[0]                                             # [10, D]

    # ---- fused QKV projection: one wide MXU matmul per layer
    qkv = jnp.dot(x, wqkv, preferred_element_type=jnp.float32)   # [BT, 3D]
    q = qkv[:, 0 * D:1 * D] + vec[_BQ:_BQ + 1]
    k = qkv[:, 1 * D:2 * D] + vec[_BK:_BK + 1]
    v = qkv[:, 2 * D:3 * D] + vec[_BV:_BV + 1]

    # causal mask: [1, T, T], broadcast over batch (cheap VPU iota, no tensor
    # of -1e30 materialised)
    row = jax.lax.broadcasted_iota(jnp.int32, (1, T, T), 1)
    col = jax.lax.broadcasted_iota(jnp.int32, (1, T, T), 2)
    causal = col <= row

    # ---- per-head scores / context (B-batched einsums), then concat
    # TODO(synk): batch this contraction over (B*H) at realistic scale.
    ctx_heads = []
    for h in range(H):                                           # static, H small
        qh = q[:, h * dh:(h + 1) * dh].reshape(B, T, dh)
        kh = k[:, h * dh:(h + 1) * dh].reshape(B, T, dh)
        vh = v[:, h * dh:(h + 1) * dh].reshape(B, T, dh)
        s = jnp.einsum('bqd,bkd->bqk', qh, kh,
                       preferred_element_type=jnp.float32) * scale
        s = jnp.where(causal, s, -1e30)
        s = s - jnp.max(s, axis=-1, keepdims=True)
        e = jnp.exp(s)
        p = e * pl.reciprocal(jnp.sum(e, axis=-1, keepdims=True))  # exact recip
        ctx_heads.append(jnp.einsum('bqk,bkd->bqd', p, vh,
                                    preferred_element_type=jnp.float32))
    ctx = jnp.concatenate(ctx_heads, axis=-1).reshape(BT, D)     # torch concat layout

    # ---- fused attention output projection (single dot, bias folded in)
    y = jnp.dot(ctx, wout, preferred_element_type=jnp.float32) + vec[_BOUT:_BOUT + 1]

    def layernorm(z, g, b):
        m = jnp.mean(z, axis=-1, keepdims=True)
        zc = z - m
        var = jnp.mean(zc * zc, axis=-1, keepdims=True)
        return zc * jax.lax.rsqrt(var + 1e-5) * g + b            # EUP rsqrt

    x1 = layernorm(x + y, vec[_G1:_G1 + 1], vec[_BE1:_BE1 + 1])
    h1 = jnp.maximum(jnp.dot(x1, wa1, preferred_element_type=jnp.float32)
                     + vec[_BA1:_BA1 + 1], 0.0)
    h2 = jnp.dot(h1, wa2, preferred_element_type=jnp.float32) + vec[_BA2:_BA2 + 1]
    # NOTE: matches the torch module exactly — the second residual adds the
    # post-ReLU hidden state h1 (x is reassigned before norm2).
    x_new = layernorm(h1 + h2, vec[_G2:_G2 + 1], vec[_BE2:_BE2 + 1])
    x_scr[...] = x_new

    # ---- readout on the last layer (lane-dense, classes padded to 128)
    @pl.when(l == num_layers - 1)
    def _readout():
        o_ref[...] = (jnp.dot(x_new, w_ro_ref[...],
                              preferred_element_type=jnp.float32)
                      + b_ro_ref[...])


# ----------------------------------------------------------------------------
# Wrapper: slab packing + one pallas_call, grid over layers
# ----------------------------------------------------------------------------
@functools.partial(jax.jit, static_argnums=(2,))
def forward_pallas(character_indices, params, nheads):
    B, T = character_indices.shape
    D = params['emb'].shape[1]
    C = params['w_ro'].shape[1]
    Cpad = pl.cdiv(C, 128) * 128
    H = nheads
    dh = D // H
    L = len(params['layers'])
    BT = B * T

    # ---- glue (pure JAX, once per call): gather + slab packing -------------
    x = params['emb'][character_indices].astype(jnp.float32).reshape(BT, D)
    pe = params['pe'].astype(jnp.float32)                        # [T, D]
    w_ro = jnp.pad(params['w_ro'].astype(jnp.float32), ((0, 0), (0, Cpad - C)))
    b_ro = jnp.pad(params['b_ro'].astype(jnp.float32), ((0, 0), (0, Cpad - C)))

    wqkv_all = jnp.stack([lp['wqkv'] for lp in params['layers']]
                         ).astype(jnp.float32)                   # [L, D, 3D]
    wmisc_all = jnp.stack([jnp.stack([lp['wout'], lp['wa1'], lp['wa2']])
                           for lp in params['layers']]
                          ).astype(jnp.float32)                  # [L, 3, D, D]

    def vec_rows(lp):
        bqkv = lp['bqkv'][0]
        return jnp.stack([bqkv[:D], bqkv[D:2 * D], bqkv[2 * D:],
                          lp['bout'][0], lp['g1'][0], lp['be1'][0],
                          lp['ba1'][0], lp['ba2'][0], lp['g2'][0], lp['be2'][0]])
    vec_all = jnp.stack([vec_rows(lp) for lp in params['layers']]
                        ).astype(jnp.float32)                    # [L, 10, D]

    kernel = functools.partial(fused_decoder_kernel, batch=B, seq=T, dim=D,
                               nheads=H, num_layers=L)

    # ---- VMEM budget sized to the actual resident buffers (+headroom) ------
    def _tile_words(r, c):
        return ((r + 7) // 8 * 8) * ((c + 127) // 128 * 128)
    resident_words = (
        2 * _tile_words(BT, D) + 2 * _tile_words(T, D)
        + 2 * _tile_words(D, Cpad) + 2 * _tile_words(1, Cpad)
        + 2 * _tile_words(BT, Cpad) + _tile_words(BT, D)
        + 2 * (_tile_words(D, 3 * D) + 3 * _tile_words(D, D)
               + _tile_words(_N_VEC_ROWS, D)))
    vmem_limit = int(min(max(4 * 4 * resident_words, 4 << 20), 48 << 20))

    flops = (L * (2 * BT * D * 3 * D + 4 * B * H * T * T * dh + 6 * BT * D * D)
             + 2 * BT * D * Cpad)
    transcendentals = L * (B * H * T * T + B * H * T + 4 * BT)
    bytes_accessed = 4 * (x.size + pe.size + w_ro.size + b_ro.size
                          + wqkv_all.size + wmisc_all.size + vec_all.size
                          + BT * Cpad)

    out = pl.pallas_call(
        kernel,
        out_shape=jax.ShapeDtypeStruct((BT, Cpad), jnp.float32),
        grid_spec=pltpu.PrefetchScalarGridSpec(
            num_scalar_prefetch=0,
            grid=(L,),
            in_specs=[
                pl.BlockSpec((BT, D), lambda l: (0, 0)),          # x (embeddings)
                pl.BlockSpec((T, D), lambda l: (0, 0)),           # pe
                pl.BlockSpec((D, Cpad), lambda l: (0, 0)),        # readout W
                pl.BlockSpec((1, Cpad), lambda l: (0, 0)),        # readout b
                pl.BlockSpec((1, D, 3 * D), lambda l: (l, 0, 0)),          # wqkv slab
                pl.BlockSpec((1, 3, D, D), lambda l: (l, 0, 0, 0)),        # wout/wa1/wa2 slab
                pl.BlockSpec((1, _N_VEC_ROWS, D), lambda l: (l, 0, 0)),    # bias/LN slab
            ],
            out_specs=pl.BlockSpec((BT, Cpad), lambda l: (0, 0)),
            scratch_shapes=[pltpu.VMEM((BT, D), jnp.float32)],    # resident x
        ),
        compiler_params=pltpu.CompilerParams(
            dimension_semantics=("arbitrary",),
            vmem_limit_bytes=vmem_limit,
        ),
        cost_estimate=pl.CostEstimate(flops=flops,
                                      transcendentals=transcendentals,
                                      bytes_accessed=bytes_accessed),
    )(x, pe, w_ro, b_ro, wqkv_all, wmisc_all, vec_all)
    return out.reshape(B, T, Cpad)[:, :, :C]


# ----------------------------------------------------------------------------
# Pure-JAX reference (mirrors the torch forward pass) for correctness checking
# ----------------------------------------------------------------------------
def _ref_layer_single(x, lp, nheads):
    T, D = x.shape
    dh = D // nheads
    qkv = x @ lp['wqkv'] + lp['bqkv']
    q, k, v = qkv[:, :D], qkv[:, D:2 * D], qkv[:, 2 * D:]
    row = jnp.arange(T)[:, None]
    col = jnp.arange(T)[None, :]
    logmask = jnp.where(col <= row, 0.0, -1e30)
    outs = []
    for h in range(nheads):
        qh, kh, vh = (a[:, h * dh:(h + 1) * dh] for a in (q, k, v))
        s = qh @ kh.T / (dh ** 0.5) + logmask
        w = jax.nn.softmax(s, axis=-1)
        outs.append(w @ vh)
    attn = jnp.concatenate(outs, axis=-1)
    y = attn @ lp['wout'] + lp['bout']

    def ln(z, g, b):
        m = jnp.mean(z, axis=-1, keepdims=True)
        var = jnp.mean((z - m) ** 2, axis=-1, keepdims=True)
        return (z - m) / jnp.sqrt(var + 1e-5) * g + b

    x1 = ln(x + y, lp['g1'], lp['be1'])
    h1 = jnp.maximum(x1 @ lp['wa1'] + lp['ba1'], 0.0)
    h2 = h1 @ lp['wa2'] + lp['ba2']
    return ln(h1 + h2, lp['g2'], lp['be2'])


def ref_forward(character_indices, params, nheads):
    x = params['emb'][character_indices].astype(jnp.float32)
    x = x + params['pe'][None]
    for lp in params['layers']:
        x = jax.vmap(lambda xb: _ref_layer_single(xb, lp, nheads))(x)
    return jnp.einsum('btd,dc->btc', x, params['w_ro']) + params['b_ro']


# ----------------------------------------------------------------------------
# Deterministic parameter init (shapes from the module __init__)
# ----------------------------------------------------------------------------
def init_params(key, num_classes, dim, num_layers, seq_len):
    keys = jax.random.split(key, 3 + num_layers)
    emb = 12 ** 0.5 * jax.random.uniform(keys[0], (num_classes, dim)) - 0.5
    w_ro = 0.1 * jax.random.normal(keys[1], (dim, num_classes))
    b_ro = 0.1 * jax.random.normal(keys[2], (1, num_classes))
    layers = []
    for i in range(num_layers):
        lk = jax.random.split(keys[3 + i], 8)
        layers.append({
            'wqkv': 0.1 * jax.random.normal(lk[0], (dim, 3 * dim)),
            'bqkv': 0.1 * jax.random.normal(lk[1], (1, 3 * dim)),
            'wout': 0.1 * jax.random.normal(lk[2], (dim, dim)),
            'bout': 0.1 * jax.random.normal(lk[3], (1, dim)),
            'g1': jnp.ones((1, dim), jnp.float32),
            'be1': jnp.zeros((1, dim), jnp.float32),
            'wa1': 0.1 * jax.random.normal(lk[4], (dim, dim)),
            'ba1': 0.1 * jax.random.normal(lk[5], (1, dim)),
            'wa2': 0.1 * jax.random.normal(lk[6], (dim, dim)),
            'ba2': 0.1 * jax.random.normal(lk[7], (1, dim)),
            'g2': jnp.ones((1, dim), jnp.float32),
            'be2': jnp.zeros((1, dim), jnp.float32),
        })
    # add_positional_encodings sinusoid table: [T, D]
    t = jnp.linspace(0.0, jnp.pi, seq_len)
    cos = jnp.stack([jnp.cos(t * 2.0 ** k) for k in range(dim // 2)], axis=-1)
    sin = jnp.stack([jnp.sin(t * 2.0 ** k) for k in range(dim // 2)], axis=-1)
    pe = jnp.concatenate([cos, sin], axis=-1).astype(jnp.float32)
    return {'emb': emb.astype(jnp.float32), 'pe': pe,
            'w_ro': w_ro.astype(jnp.float32), 'b_ro': b_ro.astype(jnp.float32),
            'layers': layers}


# ----------------------------------------------------------------------------
if __name__ == "__main__":
    B, T = 2, 8                 # batch, sequence length
    NUM_CLASSES, DIM, NHEADS = 16, 32, 4
    NUM_LAYERS = 2              # (module default is 12; small for the demo)

    key = jax.random.PRNGKey(0)
    pkey, ikey = jax.random.split(key)
    params = init_params(pkey, NUM_CLASSES, DIM, NUM_LAYERS, T)
    character_indices = jax.random.randint(ikey, (B, T), 0, NUM_CLASSES,
                                           dtype=jnp.int32)

    logits = forward_pallas(character_indices, params, NHEADS)
    logits = jax.block_until_ready(logits)

    ref = ref_forward(character_indices, params, NHEADS)
    assert logits.shape == (B, T, NUM_CLASSES)
    max_err = float(jnp.max(jnp.abs(logits - ref)))
    assert max_err < 1e-3, max_err

    # TODO(synk): sample()/fit() (host-side autoregressive sampling & SGD
    # training loops) are not kernel work and are intentionally not ported.
    print("KERNEL_OK")
</pallas_src>

<mosaic_0001>
module attributes {stable_mosaic.version = 11 : i64} {
  func.func @fused_decoder_kernel(%arg0: i32, %arg1: memref<16x32xf32, #tpu.memory_space<vmem>>, %arg2: memref<8x32xf32, #tpu.memory_space<vmem>>, %arg3: memref<32x128xf32, #tpu.memory_space<vmem>>, %arg4: memref<1x128xf32, #tpu.memory_space<vmem>>, %arg5: memref<1x32x96xf32, #tpu.memory_space<vmem>>, %arg6: memref<1x3x32x32xf32, #tpu.memory_space<vmem>>, %arg7: memref<1x10x32xf32, #tpu.memory_space<vmem>>, %arg8: memref<16x128xf32, #tpu.memory_space<vmem>>, %arg9: memref<16x32xf32, #tpu.memory_space<vmem>>) attributes {dimension_semantics = [#tpu.dimension_semantics<arbitrary>], iteration_bounds = array<i64: 2>, scalar_prefetch = 0 : i64, scratch_operands = 1 : i64, tpu.core_type = #tpu.core_type<tc>, window_params = [{pipeline_mode = #tpu.pipeline_mode<synchronous>, transform_indices = @transform_0, window_bounds = array<i64: 16, 32>}, {pipeline_mode = #tpu.pipeline_mode<synchronous>, transform_indices = @transform_1, window_bounds = array<i64: 8, 32>}, {pipeline_mode = #tpu.pipeline_mode<synchronous>, transform_indices = @transform_2, window_bounds = array<i64: 32, 128>}, {pipeline_mode = #tpu.pipeline_mode<synchronous>, transform_indices = @transform_3, window_bounds = array<i64: 1, 128>}, {transform_indices = @transform_4, window_bounds = array<i64: 1, 32, 96>}, {transform_indices = @transform_5, window_bounds = array<i64: 1, 3, 32, 32>}, {transform_indices = @transform_6, window_bounds = array<i64: 1, 10, 32>}, {pipeline_mode = #tpu.pipeline_mode<synchronous>, transform_indices = @transform_7, window_bounds = array<i64: 16, 128>}]} {
    %c0_i32 = arith.constant 0 : i32
    %0 = arith.cmpi eq, %arg0, %c0_i32 : i32
    %1 = arith.extui %0 : i1 to i32
    %c0_i32_0 = arith.constant 0 : i32
    %2 = arith.cmpi ne, %1, %c0_i32_0 : i32
    scf.if %2 {
      %c0_53 = arith.constant 0 : index
      %c0_54 = arith.constant 0 : index
      %194 = vector.load %arg1[%c0_53, %c0_54] : memref<16x32xf32, #tpu.memory_space<vmem>>, vector<16x32xf32>
      %195 = vector.shape_cast %194 : vector<16x32xf32> to vector<2x8x32xf32>
      %c0_55 = arith.constant 0 : index
      %c0_56 = arith.constant 0 : index
      %196 = vector.load %arg2[%c0_55, %c0_56] : memref<8x32xf32, #tpu.memory_space<vmem>>, vector<8x32xf32>
      %197 = vector.shape_cast %196 : vector<8x32xf32> to vector<1x8x32xf32>
      %198 = vector.broadcast %197 : vector<1x8x32xf32> to vector<2x8x32xf32>
      %199 = arith.addf %195, %198 : vector<2x8x32xf32>
      %200 = vector.shape_cast %199 : vector<2x8x32xf32> to vector<16x32xf32>
      %c0_57 = arith.constant 0 : index
      %c0_58 = arith.constant 0 : index
      %201 = vector.load %arg9[%c0_57, %c0_58] : memref<16x32xf32, #tpu.memory_space<vmem>>, vector<16x32xf32>
      tpu.vector_store %arg9[%c0_57, %c0_58], %200 {strides = array<i32>} : memref<16x32xf32, #tpu.memory_space<vmem>>, vector<16x32xf32>,
    } else {
    }
    %c0 = arith.constant 0 : index
    %c0_1 = arith.constant 0 : index
    %3 = vector.load %arg9[%c0, %c0_1] : memref<16x32xf32, #tpu.memory_space<vmem>>, vector<16x32xf32>
    %c0_2 = arith.constant 0 : index
    %c0_3 = arith.constant 0 : index
    %c0_4 = arith.constant 0 : index
    %4 = vector.load %arg5[%c0_2, %c0_3, %c0_4] : memref<1x32x96xf32, #tpu.memory_space<vmem>>, vector<1x32x96xf32>
    %5 = vector.shape_cast %4 : vector<1x32x96xf32> to vector<32x96xf32>
    %c0_5 = arith.constant 0 : index
    %c0_6 = arith.constant 0 : index
    %c0_7 = arith.constant 0 : index
    %c0_8 = arith.constant 0 : index
    %6 = vector.load %arg6[%c0_5, %c0_6, %c0_7, %c0_8] : memref<1x3x32x32xf32, #tpu.memory_space<vmem>>, vector<1x3x32x32xf32>
    %7 = vector.shape_cast %6 : vector<1x3x32x32xf32> to vector<3x32x32xf32>
    %8 = vector.extract_strided_slice %7 {offsets = [0, 0, 0], sizes = [1, 32, 32], strides = [1, 1, 1]} : vector<3x32x32xf32> to vector<1x32x32xf32>
    %9 = vector.shape_cast %8 : vector<1x32x32xf32> to vector<32x32xf32>
    %10 = vector.extract_strided_slice %7 {offsets = [1, 0, 0], sizes = [1, 32, 32], strides = [1, 1, 1]} : vector<3x32x32xf32> to vector<1x32x32xf32>
    %11 = vector.shape_cast %10 : vector<1x32x32xf32> to vector<32x32xf32>
    %12 = vector.extract_strided_slice %7 {offsets = [2, 0, 0], sizes = [1, 32, 32], strides = [1, 1, 1]} : vector<3x32x32xf32> to vector<1x32x32xf32>
    %13 = vector.shape_cast %12 : vector<1x32x32xf32> to vector<32x32xf32>
    %c0_9 = arith.constant 0 : index
    %c0_10 = arith.constant 0 : index
    %c0_11 = arith.constant 0 : index
    %14 = vector.load %arg7[%c0_9, %c0_10, %c0_11] : memref<1x10x32xf32, #tpu.memory_space<vmem>>, vector<1x10x32xf32>
    %15 = vector.shape_cast %14 : vector<1x10x32xf32> to vector<10x32xf32>
    %cst = arith.constant dense<0.000000e+00> : vector<16x96xf32>
    %16 = tpu.matmul %3, %5, %cst {dimension_numbers = #tpu.dot_dimension_numbers<[1], [0], [0], [1], [0, 0, 1, 1], [], []>} : vector<16x32xf32>, vector<32x96xf32>, vector<16x96xf32> -> vector<16x96xf32>
    %17 = vector.extract_strided_slice %16 {offsets = [0, 0], sizes = [16, 32], strides = [1, 1]} : vector<16x96xf32> to vector<16x32xf32>
    %18 = vector.extract_strided_slice %15 {offsets = [0, 0], sizes = [1, 32], strides = [1, 1]} : vector<10x32xf32> to vector<1x32xf32>
    %19 = vector.broadcast %18 : vector<1x32xf32> to vector<16x32xf32>
    %20 = arith.addf %17, %19 : vector<16x32xf32>
    %21 = vector.extract_strided_slice %16 {offsets = [0, 32], sizes = [16, 32], strides = [1, 1]} : vector<16x96xf32> to vector<16x32xf32>
    %22 = vector.extract_strided_slice %15 {offsets = [1, 0], sizes = [1, 32], strides = [1, 1]} : vector<10x32xf32> to vector<1x32xf32>
    %23 = vector.broadcast %22 : vector<1x32xf32> to vector<16x32xf32>
    %24 = arith.addf %21, %23 : vector<16x32xf32>
    %25 = vector.extract_strided_slice %16 {offsets = [0, 64], sizes = [16, 32], strides = [1, 1]} : vector<16x96xf32> to vector<16x32xf32>
    %26 = vector.extract_strided_slice %15 {offsets = [2, 0], sizes = [1, 32], strides = [1, 1]} : vector<10x32xf32> to vector<1x32xf32>
    %27 = vector.broadcast %26 : vector<1x32xf32> to vector<16x32xf32>
    %28 = arith.addf %25, %27 : vector<16x32xf32>
    %29 = tpu.iota {dimensions = array<i32: 1>} : vector<1x8x8xi32>
    %30 = tpu.iota {dimensions = array<i32: 2>} : vector<1x8x8xi32>
    %31 = arith.cmpi sle, %30, %29 : vector<1x8x8xi32>
    %32 = vector.extract_strided_slice %20 {offsets = [0, 0], sizes = [16, 8], strides = [1, 1]} : vector<16x32xf32> to vector<16x8xf32>
    %33 = vector.shape_cast %32 : vector<16x8xf32> to vector<2x8x8xf32>
    %34 = vector.extract_strided_slice %24 {offsets = [0, 0], sizes = [16, 8], strides = [1, 1]} : vector<16x32xf32> to vector<16x8xf32>
    %35 = vector.shape_cast %34 : vector<16x8xf32> to vector<2x8x8xf32>
    %36 = vector.extract_strided_slice %28 {offsets = [0, 0], sizes = [16, 8], strides = [1, 1]} : vector<16x32xf32> to vector<16x8xf32>
    %37 = vector.shape_cast %36 : vector<16x8xf32> to vector<2x8x8xf32>
    "tpu.trace_start"() <{level = 10 : i32, message = "bqd,bkd->bqk"}> : () -> ()
    %cst_12 = arith.constant dense<0.000000e+00> : vector<2x8x8xf32>
    %38 = tpu.matmul %33, %35, %cst_12 {dimension_numbers = #tpu.dot_dimension_numbers<[2], [2], [1], [1], [0, 0, 0, 1, 1, 1], [0], [0]>} : vector<2x8x8xf32>, vector<2x8x8xf32>, vector<2x8x8xf32> -> vector<2x8x8xf32>
    "tpu.trace_stop"() : () -> ()
    %cst_13 = arith.constant 0.353553385 : f32
    %39 = vector.broadcast %cst_13 : f32 to vector<2x8x8xf32>
    %40 = arith.mulf %38, %39 : vector<2x8x8xf32>
    %cst_14 = arith.constant -1.000000e+30 : f32
    %41 = vector.shape_cast %31 : vector<1x8x8xi1> to vector<1x8x8xi1>
    %42 = vector.broadcast %41 : vector<1x8x8xi1> to vector<2x8x8xi1>
    %43 = vector.broadcast %cst_14 : f32 to vector<2x8x8xf32>
    %44 = arith.select %42, %40, %43 : vector<2x8x8xi1>, vector<2x8x8xf32>
    %cst_15 = arith.constant dense<0xFF800000> : vector<2x8xf32>
    %45 = vector.multi_reduction <maximumf>, %44, %cst_15 [2] : vector<2x8x8xf32> to vector<2x8xf32>
    %46 = vector.shape_cast %45 : vector<2x8xf32> to vector<2x8x1xf32>
    %47 = vector.broadcast %46 : vector<2x8x1xf32> to vector<2x8x8xf32>
    %48 = arith.subf %44, %47 : vector<2x8x8xf32>
    %49 = math.exp %48 : vector<2x8x8xf32>
    %cst_16 = arith.constant dense<0.000000e+00> : vector<2x8xf32>
    %50 = vector.multi_reduction <add>, %49, %cst_16 [2] : vector<2x8x8xf32> to vector<2x8xf32>
    %51 = vector.shape_cast %50 : vector<2x8xf32> to vector<2x8x1xf32>
    %52 = tpu.reciprocal %51 : vector<2x8x1xf32> -> vector<2x8x1xf32>
    %53 = vector.broadcast %52 : vector<2x8x1xf32> to vector<2x8x8xf32>
    %54 = arith.mulf %49, %53 : vector<2x8x8xf32>
    "tpu.trace_start"() <{level = 10 : i32, message = "bqk,bkd->bqd"}> : () -> ()
    %cst_17 = arith.constant dense<0.000000e+00> : vector<2x8x8xf32>
    %55 = tpu.matmul %54, %37, %cst_17 {dimension_numbers = #tpu.dot_dimension_numbers<[2], [1], [1], [2], [0, 0, 0, 1, 1, 2], [0], [0]>} : vector<2x8x8xf32>, vector<2x8x8xf32>, vector<2x8x8xf32> -> vector<2x8x8xf32>
    "tpu.trace_stop"() : () -> ()
    %56 = vector.extract_strided_slice %20 {offsets = [0, 8], sizes = [16, 8], strides = [1, 1]} : vector<16x32xf32> to vector<16x8xf32>
    %57 = vector.shape_cast %56 : vector<16x8xf32> to vector<2x8x8xf32>
    %58 = vector.extract_strided_slice %24 {offsets = [0, 8], sizes = [16, 8], strides = [1, 1]} : vector<16x32xf32> to vector<16x8xf32>
    %59 = vector.shape_cast %58 : vector<16x8xf32> to vector<2x8x8xf32>
    %60 = vector.extract_strided_slice %28 {offsets = [0, 8], sizes = [16, 8], strides = [1, 1]} : vector<16x32xf32> to vector<16x8xf32>
    %61 = vector.shape_cast %60 : vector<16x8xf32> to vector<2x8x8xf32>
    "tpu.trace_start"() <{level = 10 : i32, message = "bqd,bkd->bqk"}> : () -> ()
    %cst_18 = arith.constant dense<0.000000e+00> : vector<2x8x8xf32>
    %62 = tpu.matmul %57, %59, %cst_18 {dimension_numbers = #tpu.dot_dimension_numbers<[2], [2], [1], [1], [0, 0, 0, 1, 1, 1], [0], [0]>} : vector<2x8x8xf32>, vector<2x8x8xf32>, vector<2x8x8xf32> -> vector<2x8x8xf32>
    "tpu.trace_stop"() : () -> ()
    %cst_19 = arith.constant 0.353553385 : f32
    %63 = vector.broadcast %cst_19 : f32 to vector<2x8x8xf32>
    %64 = arith.mulf %62, %63 : vector<2x8x8xf32>
    %cst_20 = arith.constant -1.000000e+30 : f32
    %65 = vector.shape_cast %31 : vector<1x8x8xi1> to vector<1x8x8xi1>
    %66 = vector.broadcast %65 : vector<1x8x8xi1> to vector<2x8x8xi1>
    %67 = vector.broadcast %cst_20 : f32 to vector<2x8x8xf32>
    %68 = arith.select %66, %64, %67 : vector<2x8x8xi1>, vector<2x8x8xf32>
    %cst_21 = arith.constant dense<0xFF800000> : vector<2x8xf32>
    %69 = vector.multi_reduction <maximumf>, %68, %cst_21 [2] : vector<2x8x8xf32> to vector<2x8xf32>
    %70 = vector.shape_cast %69 : vector<2x8xf32> to vector<2x8x1xf32>
    %71 = vector.broadcast %70 : vector<2x8x1xf32> to vector<2x8x8xf32>
    %72 = arith.subf %68, %71 : vector<2x8x8xf32>
    %73 = math.exp %72 : vector<2x8x8xf32>
    %cst_22 = arith.constant dense<0.000000e+00> : vector<2x8xf32>
    %74 = vector.multi_reduction <add>, %73, %cst_22 [2] : vector<2x8x8xf32> to vector<2x8xf32>
    %75 = vector.shape_cast %74 : vector<2x8xf32> to vector<2x8x1xf32>
    %76 = tpu.reciprocal %75 : vector<2x8x1xf32> -> vector<2x8x1xf32>
    %77 = vector.broadcast %76 : vector<2x8x1xf32> to vector<2x8x8xf32>
    %78 = arith.mulf %73, %77 : vector<2x8x8xf32>
    "tpu.trace_start"() <{level = 10 : i32, message = "bqk,bkd->bqd"}> : () -> ()
    %cst_23 = arith.constant dense<0.000000e+00> : vector<2x8x8xf32>
    %79 = tpu.matmul %78, %61, %cst_23 {dimension_numbers = #tpu.dot_dimension_numbers<[2], [1], [1], [2], [0, 0, 0, 1, 1, 2], [0], [0]>} : vector<2x8x8xf32>, vector<2x8x8xf32>, vector<2x8x8xf32> -> vector<2x8x8xf32>
    "tpu.trace_stop"() : () -> ()
    %80 = vector.extract_strided_slice %20 {offsets = [0, 16], sizes = [16, 8], strides = [1, 1]} : vector<16x32xf32> to vector<16x8xf32>
    %81 = vector.shape_cast %80 : vector<16x8xf32> to vector<2x8x8xf32>
    %82 = vector.extract_strided_slice %24 {offsets = [0, 16], sizes = [16, 8], strides = [1, 1]} : vector<16x32xf32> to vector<16x8xf32>
    %83 = vector.shape_cast %82 : vector<16x8xf32> to vector<2x8x8xf32>
    %84 = vector.extract_strided_slice %28 {offsets = [0, 16], sizes = [16, 8], strides = [1, 1]} : vector<16x32xf32> to vector<16x8xf32>
    %85 = vector.shape_cast %84 : vector<16x8xf32> to vector<2x8x8xf32>
    "tpu.trace_start"() <{level = 10 : i32, message = "bqd,bkd->bqk"}> : () -> ()
    %cst_24 = arith.constant dense<0.000000e+00> : vector<2x8x8xf32>
    %86 = tpu.matmul %81, %83, %cst_24 {dimension_numbers = #tpu.dot_dimension_numbers<[2], [2], [1], [1], [0, 0, 0, 1, 1, 1], [0], [0]>} : vector<2x8x8xf32>, vector<2x8x8xf32>, vector<2x8x8xf32> -> vector<2x8x8xf32>
    "tpu.trace_stop"() : () -> ()
    %cst_25 = arith.constant 0.353553385 : f32
    %87 = vector.broadcast %cst_25 : f32 to vector<2x8x8xf32>
    %88 = arith.mulf %86, %87 : vector<2x8x8xf32>
    %cst_26 = arith.constant -1.000000e+30 : f32
    %89 = vector.shape_cast %31 : vector<1x8x8xi1> to vector<1x8x8xi1>
    %90 = vector.broadcast %89 : vector<1x8x8xi1> to vector<2x8x8xi1>
    %91 = vector.broadcast %cst_26 : f32 to vector<2x8x8xf32>
    %92 = arith.select %90, %88, %91 : vector<2x8x8xi1>, vector<2x8x8xf32>
    %cst_27 = arith.constant dense<0xFF800000> : vector<2x8xf32>
    %93 = vector.multi_reduction <maximumf>, %92, %cst_27 [2] : vector<2x8x8xf32> to vector<2x8xf32>
    %94 = vector.shape_cast %93 : vector<2x8xf32> to vector<2x8x1xf32>
    %95 = vector.broadcast %94 : vector<2x8x1xf32> to vector<2x8x8xf32>
    %96 = arith.subf %92, %95 : vector<2x8x8xf32>
    %97 = math.exp %96 : vector<2x8x8xf32>
    %cst_28 = arith.constant dense<0.000000e+00> : vector<2x8xf32>
    %98 = vector.multi_reduction <add>, %97, %cst_28 [2] : vector<2x8x8xf32> to vector<2x8xf32>
    %99 = vector.shape_cast %98 : vector<2x8xf32> to vector<2x8x1xf32>
    %100 = tpu.reciprocal %99 : vector<2x8x1xf32> -> vector<2x8x1xf32>
    %101 = vector.broadcast %100 : vector<2x8x1xf32> to vector<2x8x8xf32>
    %102 = arith.mulf %97, %101 : vector<2x8x8xf32>
    "tpu.trace_start"() <{level = 10 : i32, message = "bqk,bkd->bqd"}> : () -> ()
    %cst_29 = arith.constant dense<0.000000e+00> : vector<2x8x8xf32>
    %103 = tpu.matmul %102, %85, %cst_29 {dimension_numbers = #tpu.dot_dimension_numbers<[2], [1], [1], [2], [0, 0, 0, 1, 1, 2], [0], [0]>} : vector<2x8x8xf32>, vector<2x8x8xf32>, vector<2x8x8xf32> -> vector<2x8x8xf32>
    "tpu.trace_stop"() : () -> ()
    %104 = vector.extract_strided_slice %20 {offsets = [0, 24], sizes = [16, 8], strides = [1, 1]} : vector<16x32xf32> to vector<16x8xf32>
    %105 = vector.shape_cast %104 : vector<16x8xf32> to vector<2x8x8xf32>
    %106 = vector.extract_strided_slice %24 {offsets = [0, 24], sizes = [16, 8], strides = [1, 1]} : vector<16x32xf32> to vector<16x8xf32>
    %107 = vector.shape_cast %106 : vector<16x8xf32> to vector<2x8x8xf32>
    %108 = vector.extract_strided_slice %28 {offsets = [0, 24], sizes = [16, 8], strides = [1, 1]} : vector<16x32xf32> to vector<16x8xf32>
    %109 = vector.shape_cast %108 : vector<16x8xf32> to vector<2x8x8xf32>
    "tpu.trace_start"() <{level = 10 : i32, message = "bqd,bkd->bqk"}> : () -> ()
    %cst_30 = arith.constant dense<0.000000e+00> : vector<2x8x8xf32>
    %110 = tpu.matmul %105, %107, %cst_30 {dimension_numbers = #tpu.dot_dimension_numbers<[2], [2], [1], [1], [0, 0, 0, 1, 1, 1], [0], [0]>} : vector<2x8x8xf32>, vector<2x8x8xf32>, vector<2x8x8xf32> -> vector<2x8x8xf32>
    "tpu.trace_stop"() : () -> ()
    %cst_31 = arith.constant 0.353553385 : f32
    %111 = vector.broadcast %cst_31 : f32 to vector<2x8x8xf32>
    %112 = arith.mulf %110, %111 : vector<2x8x8xf32>
    %cst_32 = arith.constant -1.000000e+30 : f32
    %113 = vector.shape_cast %31 : vector<1x8x8xi1> to vector<1x8x8xi1>
    %114 = vector.broadcast %113 : vector<1x8x8xi1> to vector<2x8x8xi1>
    %115 = vector.broadcast %cst_32 : f32 to vector<2x8x8xf32>
    %116 = arith.select %114, %112, %115 : vector<2x8x8xi1>, vector<2x8x8xf32>
    %cst_33 = arith.constant dense<0xFF800000> : vector<2x8xf32>
    %117 = vector.multi_reduction <maximumf>, %116, %cst_33 [2] : vector<2x8x8xf32> to vector<2x8xf32>
    %118 = vector.shape_cast %117 : vector<2x8xf32> to vector<2x8x1xf32>
    %119 = vector.broadcast %118 : vector<2x8x1xf32> to vector<2x8x8xf32>
    %120 = arith.subf %116, %119 : vector<2x8x8xf32>
    %121 = math.exp %120 : vector<2x8x8xf32>
    %cst_34 = arith.constant dense<0.000000e+00> : vector<2x8xf32>
    %122 = vector.multi_reduction <add>, %121, %cst_34 [2] : vector<2x8x8xf32> to vector<2x8xf32>
    %123 = vector.shape_cast %122 : vector<2x8xf32> to vector<2x8x1xf32>
    %124 = tpu.reciprocal %123 : vector<2x8x1xf32> -> vector<2x8x1xf32>
    %125 = vector.broadcast %124 : vector<2x8x1xf32> to vector<2x8x8xf32>
    %126 = arith.mulf %121, %125 : vector<2x8x8xf32>
    "tpu.trace_start"() <{level = 10 : i32, message = "bqk,bkd->bqd"}> : () -> ()
    %cst_35 = arith.constant dense<0.000000e+00> : vector<2x8x8xf32>
    %127 = tpu.matmul %126, %109, %cst_35 {dimension_numbers = #tpu.dot_dimension_numbers<[2], [1], [1], [2], [0, 0, 0, 1, 1, 2], [0], [0]>} : vector<2x8x8xf32>, vector<2x8x8xf32>, vector<2x8x8xf32> -> vector<2x8x8xf32>
    "tpu.trace_stop"() : () -> ()
    %128 = tpu.concatenate %55, %79, %103, %127 in 2 : vector<2x8x8xf32>, vector<2x8x8xf32>, vector<2x8x8xf32>, vector<2x8x8xf32> -> vector<2x8x32xf32>
    %129 = vector.shape_cast %128 : vector<2x8x32xf32> to vector<16x32xf32>
    %cst_36 = arith.constant dense<0.000000e+00> : vector<16x32xf32>
    %130 = tpu.matmul %129, %9, %cst_36 {dimension_numbers = #tpu.dot_dimension_numbers<[1], [0], [0], [1], [0, 0, 1, 1], [], []>} : vector<16x32xf32>, vector<32x32xf32>, vector<16x32xf32> -> vector<16x32xf32>
    %131 = vector.extract_strided_slice %15 {offsets = [3, 0], sizes = [1, 32], strides = [1, 1]} : vector<10x32xf32> to vector<1x32xf32>
    %132 = vector.broadcast %131 : vector<1x32xf32> to vector<16x32xf32>
    %133 = arith.addf %130, %132 : vector<16x32xf32>
    %134 = arith.addf %3, %133 : vector<16x32xf32>
    %135 = vector.extract_strided_slice %15 {offsets = [4, 0], sizes = [1, 32], strides = [1, 1]} : vector<10x32xf32> to vector<1x32xf32>
    %136 = vector.extract_strided_slice %15 {offsets = [5, 0], sizes = [1, 32], strides = [1, 1]} : vector<10x32xf32> to vector<1x32xf32>
    %cst_37 = arith.constant dense<0.000000e+00> : vector<16xf32>
    %137 = vector.multi_reduction <add>, %134, %cst_37 [1] : vector<16x32xf32> to vector<16xf32>
    %138 = vector.shape_cast %137 : vector<16xf32> to vector<16x1xf32>
    %cst_38 = arith.constant 3.200000e+01 : f32
    %139 = vector.broadcast %cst_38 : f32 to vector<16x1xf32>
    %140 = arith.divf %138, %139 : vector<16x1xf32>
    %141 = vector.broadcast %140 : vector<16x1xf32> to vector<16x32xf32>
    %142 = arith.subf %134, %141 : vector<16x32xf32>
    %143 = arith.mulf %142, %142 : vector<16x32xf32>
    %cst_39 = arith.constant dense<0.000000e+00> : vector<16xf32>
    %144 = vector.multi_reduction <add>, %143, %cst_39 [1] : vector<16x32xf32> to vector<16xf32>
    %145 = vector.shape_cast %144 : vector<16xf32> to vector<16x1xf32>
    %cst_40 = arith.constant 3.200000e+01 : f32
    %146 = vector.broadcast %cst_40 : f32 to vector<16x1xf32>
    %147 = arith.divf %145, %146 : vector<16x1xf32>
    %cst_41 = arith.constant 9.99999974E-6 : f32
    %148 = vector.broadcast %cst_41 : f32 to vector<16x1xf32>
    %149 = arith.addf %147, %148 : vector<16x1xf32>
    %150 = math.rsqrt %149 : vector<16x1xf32>
    %151 = vector.broadcast %150 : vector<16x1xf32> to vector<16x32xf32>
    %152 = arith.mulf %142, %151 : vector<16x32xf32>
    %153 = vector.broadcast %135 : vector<1x32xf32> to vector<16x32xf32>
    %154 = arith.mulf %152, %153 : vector<16x32xf32>
    %155 = vector.broadcast %136 : vector<1x32xf32> to vector<16x32xf32>
    %156 = arith.addf %154, %155 : vector<16x32xf32>
    %cst_42 = arith.constant dense<0.000000e+00> : vector<16x32xf32>
    %157 = tpu.matmul %156, %11, %cst_42 {dimension_numbers = #tpu.dot_dimension_numbers<[1], [0], [0], [1], [0, 0, 1, 1], [], []>} : vector<16x32xf32>, vector<32x32xf32>, vector<16x32xf32> -> vector<16x32xf32>
    %158 = vector.extract_strided_slice %15 {offsets = [6, 0], sizes = [1, 32], strides = [1, 1]} : vector<10x32xf32> to vector<1x32xf32>
    %159 = vector.broadcast %158 : vector<1x32xf32> to vector<16x32xf32>
    %160 = arith.addf %157, %159 : vector<16x32xf32>
    %cst_43 = arith.constant 0.000000e+00 : f32
    %161 = vector.broadcast %cst_43 : f32 to vector<16x32xf32>
    %162 = arith.maximumf %160, %161 : vector<16x32xf32>
    %cst_44 = arith.constant dense<0.000000e+00> : vector<16x32xf32>
    %163 = tpu.matmul %162, %13, %cst_44 {dimension_numbers = #tpu.dot_dimension_numbers<[1], [0], [0], [1], [0, 0, 1, 1], [], []>} : vector<16x32xf32>, vector<32x32xf32>, vector<16x32xf32> -> vector<16x32xf32>
    %164 = vector.extract_strided_slice %15 {offsets = [7, 0], sizes = [1, 32], strides = [1, 1]} : vector<10x32xf32> to vector<1x32xf32>
    %165 = vector.broadcast %164 : vector<1x32xf32> to vector<16x32xf32>
    %166 = arith.addf %163, %165 : vector<16x32xf32>
    %167 = arith.addf %162, %166 : vector<16x32xf32>
    %168 = vector.extract_strided_slice %15 {offsets = [8, 0], sizes = [1, 32], strides = [1, 1]} : vector<10x32xf32> to vector<1x32xf32>
    %169 = vector.extract_strided_slice %15 {offsets = [9, 0], sizes = [1, 32], strides = [1, 1]} : vector<10x32xf32> to vector<1x32xf32>
    %cst_45 = arith.constant dense<0.000000e+00> : vector<16xf32>
    %170 = vector.multi_reduction <add>, %167, %cst_45 [1] : vector<16x32xf32> to vector<16xf32>
    %171 = vector.shape_cast %170 : vector<16xf32> to vector<16x1xf32>
    %cst_46 = arith.constant 3.200000e+01 : f32
    %172 = vector.broadcast %cst_46 : f32 to vector<16x1xf32>
    %173 = arith.divf %171, %172 : vector<16x1xf32>
    %174 = vector.broadcast %173 : vector<16x1xf32> to vector<16x32xf32>
    %175 = arith.subf %167, %174 : vector<16x32xf32>
    %176 = arith.mulf %175, %175 : vector<16x32xf32>
    %cst_47 = arith.constant dense<0.000000e+00> : vector<16xf32>
    %177 = vector.multi_reduction <add>, %176, %cst_47 [1] : vector<16x32xf32> to vector<16xf32>
    %178 = vector.shape_cast %177 : vector<16xf32> to vector<16x1xf32>
    %cst_48 = arith.constant 3.200000e+01 : f32
    %179 = vector.broadcast %cst_48 : f32 to vector<16x1xf32>
    %180 = arith.divf %178, %179 : vector<16x1xf32>
    %cst_49 = arith.constant 9.99999974E-6 : f32
    %181 = vector.broadcast %cst_49 : f32 to vector<16x1xf32>
    %182 = arith.addf %180, %181 : vector<16x1xf32>
    %183 = math.rsqrt %182 : vector<16x1xf32>
    %184 = vector.broadcast %183 : vector<16x1xf32> to vector<16x32xf32>
    %185 = arith.mulf %175, %184 : vector<16x32xf32>
    %186 = vector.broadcast %168 : vector<1x32xf32> to vector<16x32xf32>
    %187 = arith.mulf %185, %186 : vector<16x32xf32>
    %188 = vector.broadcast %169 : vector<1x32xf32> to vector<16x32xf32>
    %189 = arith.addf %187, %188 : vector<16x32xf32>
    %c0_50 = arith.constant 0 : index
    %c0_51 = arith.constant 0 : index
    %190 = vector.load %arg9[%c0_50, %c0_51] : memref<16x32xf32, #tpu.memory_space<vmem>>, vector<16x32xf32>
    tpu.vector_store %arg9[%c0_50, %c0_51], %189 {strides = array<i32>} : memref<16x32xf32, #tpu.memory_space<vmem>>, vector<16x32xf32>,
    %c1_i32 = arith.constant 1 : i32
    %191 = arith.cmpi eq, %arg0, %c1_i32 : i32
    %192 = arith.extui %191 : i1 to i32
    %c0_i32_52 = arith.constant 0 : i32
    %193 = arith.cmpi ne, %192, %c0_i32_52 : i32
    scf.if %193 {
      %c0_53 = arith.constant 0 : index
      %c0_54 = arith.constant 0 : index
      %194 = vector.load %arg3[%c0_53, %c0_54] : memref<32x128xf32, #tpu.memory_space<vmem>>, vector<32x128xf32>
      %cst_55 = arith.constant dense<0.000000e+00> : vector<16x128xf32>
      %195 = tpu.matmul %189, %194, %cst_55 {dimension_numbers = #tpu.dot_dimension_numbers<[1], [0], [0], [1], [0, 0, 1, 1], [], []>} : vector<16x32xf32>, vector<32x128xf32>, vector<16x128xf32> -> vector<16x128xf32>
      %c0_56 = arith.constant 0 : index
      %c0_57 = arith.constant 0 : index
      %196 = vector.load %arg4[%c0_56, %c0_57] : memref<1x128xf32, #tpu.memory_space<vmem>>, vector<1x128xf32>
      %197 = vector.broadcast %196 : vector<1x128xf32> to vector<16x128xf32>
      %198 = arith.addf %195, %197 : vector<16x128xf32>
      %c0_58 = arith.constant 0 : index
      %c0_59 = arith.constant 0 : index
      %199 = vector.load %arg8[%c0_58, %c0_59] : memref<16x128xf32, #tpu.memory_space<vmem>>, vector<16x128xf32>
      tpu.vector_store %arg8[%c0_58, %c0_59], %198 {strides = array<i32>} : memref<16x128xf32, #tpu.memory_space<vmem>>, vector<16x128xf32>,
    } else {
    }
    return
  }
  func.func @transform_0(%arg0: i32) -> (i32, i32) {
    %c0_i32 = arith.constant 0 : i32
    %c0_i32_0 = arith.constant 0 : i32
    %c0_i32_1 = arith.constant 0 : i32
    return %c0_i32, %c0_i32_0 : i32, i32
  }
  func.func @transform_1(%arg0: i32) -> (i32, i32) {
    %c0_i32 = arith.constant 0 : i32
    %c0_i32_0 = arith.constant 0 : i32
    %c0_i32_1 = arith.constant 0 : i32
    return %c0_i32, %c0_i32_0 : i32, i32
  }
  func.func @transform_2(%arg0: i32) -> (i32, i32) {
    %c0_i32 = arith.constant 0 : i32
    %c0_i32_0 = arith.constant 0 : i32
    %c0_i32_1 = arith.constant 0 : i32
    return %c0_i32, %c0_i32_0 : i32, i32
  }
  func.func @transform_3(%arg0: i32) -> (i32, i32) {
    %c0_i32 = arith.constant 0 : i32
    %c0_i32_0 = arith.constant 0 : i32
    %c0_i32_1 = arith.constant 0 : i32
    return %c0_i32, %c0_i32_0 : i32, i32
  }
  func.func @transform_4(%arg0: i32) -> (i32, i32, i32) {
    %c0_i32 = arith.constant 0 : i32
    %c0_i32_0 = arith.constant 0 : i32
    %c0_i32_1 = arith.constant 0 : i32
    return %arg0, %c0_i32, %c0_i32_0 : i32, i32, i32
  }
  func.func @transform_5(%arg0: i32) -> (i32, i32, i32, i32) {
    %c0_i32 = arith.constant 0 : i32
    %c0_i32_0 = arith.constant 0 : i32
    %c0_i32_1 = arith.constant 0 : i32
    %c0_i32_2 = arith.constant 0 : i32
    return %arg0, %c0_i32, %c0_i32_0, %c0_i32_1 : i32, i32, i32, i32
  }
  func.func @transform_6(%arg0: i32) -> (i32, i32, i32) {
    %c0_i32 = arith.constant 0 : i32
    %c0_i32_0 = arith.constant 0 : i32
    %c0_i32_1 = arith.constant 0 : i32
    return %arg0, %c0_i32, %c0_i32_0 : i32, i32, i32
  }
  func.func @transform_7(%arg0: i32) -> (i32, i32) {
    %c0_i32 = arith.constant 0 : i32
    %c0_i32_0 = arith.constant 0 : i32
    %c0_i32_1 = arith.constant 0 : i32
    return %c0_i32, %c0_i32_0 : i32, i32
  }
}

</mosaic_0001>

<bundles_post_ra>
// kernel: forward_pallas.1
= control target key start
LH: loop header
LB: loop body
LE: loop exit
PB: predicated region body
PF: predicated region fallthrough
CT: control target
= control target key end

     0   :  { %12 = vsyncpa [#allocation4], 0  ;;  %s2751_s24 = smov 0   ;;  %s3049_s0 = inlined_call_operand.vmem [shape: f32[16,32], index: 0, kind: input, shape index: {}]   ;;  %s3050_s1 = inlined_call_operand.vmem [shape: f32[8,32], index: 1, kind: input, shape index: {}]   ;;  %s3051_s2 = inlined_call_operand.vmem [shape: f32[32,128], index: 2, kind: input, shape index: {}]   ;;  %s3052_s3 = inlined_call_operand.vmem [shape: f32[1,128], index: 3, kind: input, shape index: {}]   ;;  %s3053_s4 = inlined_call_operand.vmem [shape: f32[2,32,96], index: 4, kind: input, shape index: {}]   ;;  %s3054_s5 = inlined_call_operand.vmem [shape: f32[2,3,32,32], index: 5, kind: input, shape index: {}]   ;;  %s3055_s6 = inlined_call_operand.vmem [shape: f32[2,10,32], index: 6, kind: input, shape index: {}]   ;;  %s3056_s7 = inlined_call_operand.hbm [shape: f32[16,128], index: 7, kind: output, shape index: {}]  }
   0x1 LB: > { %s2757_s25 = sadd.s32 4294967295, %s2690_s24   ;;  %p2336_p0 = scmp.ge.s32.totalorder %s2690_s24, 1  ;;  %s2690_s24 = sphi %s2751_s24, %s18_s24  }
   0x2   : > { %p253_p1 = scmp.lt.s32.totalorder %s2690_s24, 3 }
   0x4   : > { %p254_p2 = pnand %p2336_p0, %p253_p1 }
   0x5   : > { %p290_p3 = scmp.lt.s32.totalorder (!%p254_p2), %s2757_s25, 1  ;;  %p2342_p4 = scmp.ne.s32.totalorder (!%p254_p2), %s2757_s25, 0 }
   0x6   : > { %257 = sbr.rel (%p254_p2) target bundleno = 4213 (0x1075), region = 48 }
   0xb   : > { %s291_s26 = scalar_select %p290_p3, %s2757_s25, 1 }
   0xc   : > { %308 = sbr.rel (%p2342_p4) target bundleno = 22 (0x16), region = 52 }
   0xd   : > { %s2383_s27 = sshll.u32 %s291_s26, 5  ;;  %s2582_s28 = smul.u32 96, %s291_s26 }
   0xe   : > { %s294_s8 = scalar_lea.vmem %s3053_s4, %s2383_s27  ;;  %s2384_s9 = sshll.u32 %s291_s26, 4 }
   0xf   : > { %s2769_s12 = scalar_lea.vmem %s3054_s5, %s2582_s28  ;;  %s2774_s15 = scalar_lea.vmem %s3055_s6, %s2384_s9 }
  0x11   : > { %v309_v0 = vld [vmem:[%s3049_s0] sm:$0xff]  ;;  %vm314_vm0 = vcmask 261120   ;;  %v310_v2 = vld [vmem:[%s3049_s0 + $0x8] sm:$0xff] }
  0x12   : > { %v311_v1 = vld [vmem:[%s3050_s1] sm:$0xff] }
  0x13   : > { %v312_v3 = vadd.f32 %v311_v1, %v309_v0  ;;  %v313_v4 = vadd.f32 %v311_v1, %v310_v2 }
  0x15   : > { %315 = vst.msk [vmem:[#allocation2] sm:$0xff] %vm314_vm0, %v312_v3  ;;  %316 = vst.msk [vmem:[#allocation2 + $0x8] sm:$0xff] %vm314_vm0, %v313_v4 }
  0x16 PF: > { %v322_v5 = vld [vmem:[%s294_s8 + $0x18] sm:$0xff]  ;;  %v321_v6 = vld [vmem:[%s294_s8 + $0x10] sm:$0xff]  ;;  %vm337_vm1 = vcmask 261120   ;;  %v419_v7 = vlaneseq  ;;  %v320_v9 = vld [vmem:[%s294_s8 + $0x8] sm:$0xff]  ;;  %s2692_s22 = smov 32   ;;  %v2693_v16 = vmov 0.0  }
  0x17   : > { %2447 = vmatprep.subr.mxu0 %v322_v5  ;;  %v2793_v11 = vld [vmem:[%s2774_s15] sm:$0xff]  ;;  %2458 = vmatprep.subr.mxu1 %v2693_v16  ;;  %vm2694_vm2 = vmmov 0   ;;  %s2695_s23 = smov 96   ;;  %vm453_vm3 = vcmask 64512   ;;  %s2696_s26 = smov 64   ;;  %vm1820_vm5 = vcmask 195584  }
  0x18   : > { %2448 = vmatpush3.msra.mxu0 %v322_v5  ;;  %v2790_v10 = vshrl.u32 %v419_v7, 7  ;;  %v319_v12 = vld [vmem:[%s294_s8] sm:$0xff]  ;;  %2460 = vmatprep.mubr.msk.f32.mxu1 %vm2694_vm2, %v2693_v16  ;;  %v448_v28 = vand.u32 127, %v419_v7  ;;  %s2697_s27 = smov 88   ;;  %s2698_s28 = smov 120   ;;  %vm1817_vm6 = vcmask 130048  }
  0x19   : > { %2449 = vmatprep.subr.mxu0 %v321_v6  ;;  %s2699_s29 = smov 56   ;;  %s2700_s30 = smov 80  }
  0x1a   : > { %2450 = vmatpush3.msra.mxu0 %v321_v6  ;;  %v427_v13 = vsub.s32 1, %v2790_v10  ;;  %v421_v22 = vsub.s32 0, %v2790_v10  ;;  %vm2836_vm4 = vcmp.le.s32.totalorder %v448_v28, %v2790_v10  ;;  %v437_v40 = vsub.s32 2, %v2790_v10  ;;  %s2701_s8 = smov 112   ;;  %s2702_s9 = smov 48  }
  0x1b   : > { %2451 = vmatprep.subr.mxu0 %v320_v9  ;;  %s2703_s10 = smov 72   ;;  %s2704_s11 = smov 104  }
  0x1c   : > { %v2786_v8 = vld [vmem:[#allocation2] sm:$0xff]  ;;  %2452 = vmatpush3.msra.mxu0 %v320_v9  ;;  %v2796_v14 = vld [vmem:[#allocation2 + $0x8] sm:$0xff]  ;;  %v428_v15 = vrot.slane %v2793_v11, %v427_v13  ;;  %v422_v23 = vrot.slane %v2793_v11, %v421_v22  ;;  %v438_v41 = vrot.slane %v2793_v11, %v437_v40  ;;  %s2705_s13 = smov 40   ;;  %s2706_s14 = smov 8  }
  0x1d   : > { %2455 = vmatprep.mubr.msk.f32.mxu0 %vm337_vm1, %v2786_v8  ;;  %2453 = vmatprep.subr.mxu0 %v319_v12  ;;  %s2707_s16 = smov 16   ;;  %s2708_s17 = smov 24  }
  0x1e   : > { %2454 = vmatpush3.msra.mxu0 %v319_v12  ;;  %430 = vrot.lane.b32.xlu0 %v428_v15, %s2692_s22  ;;  %p2375_p5 = scmp.ne.s32.totalorder %s2757_s25, 1 }
  0x1f   : > { %2456 = vmatmul.mubr.msk.f32.vlgmr.msra.gmra.mxu0 %vm337_vm1, %v2796_v14  ;;  %2478 = vmatprep.subr.mxu0 %v2693_v16 }
  0x20   : > { %2480 = vmatprep.mubr.msk.f32.mxu0 %vm2694_vm2, %v2693_v16 }
  0x90   : > { %v431_v17 = vpop.permute.xlu0 %430 }
  0xdf   : > { %v2457_v18 = vpop.f32.mrf.mxu0 }
  0xe0   : > { %v2809_v19 = vadd.f32 %v2457_v18, %v431_v17  ;;  %v2828_v27 = vadd.f32 %v2457_v18, %v422_v23 }
  0xe1   : > { %v410_v20 = vpop.f32.mrf.mxu0 }
  0xe2   : > { %v2811_v21 = vadd.f32 %v431_v17, %v410_v20  ;;  %530 = vrot.lane.b32.xlu1 %v2809_v19, %s2695_s23  ;;  %v2820_v25 = vadd.f32 %v422_v23, %v410_v20 }
  0xe4   : > { %451 = vrot.lane.b32.xlu0 %v2811_v21, %s2695_s23 }
 0x154   : > { %v531_v26 = vpop.permute.xlu1 %530 }
 0x156   : > { %v452_v24 = vpop.permute.xlu0 %451 }
 0x157   : > { %2459 = vmatpush3.xpose.msk.msra.mxu1 %vm453_vm3, %v452_v24 }
 0x158   : > { %2463 = vmatprep.subr.mxu1 %v2693_v16 }
 0x15a   : > { %2461 = vmatmul.mubr.msk.f32.vlgmr.msra.gmra.mxu1 %vm453_vm3, %v2820_v25 }
 0x15b   : > { %2464 = vmatpush3.xpose.msk.msra.mxu1 %vm453_vm3, %v531_v26  ;;  %2465 = vmatprep.mubr.msk.f32.mxu1 %vm2694_vm2, %v2693_v16 }
 0x15c   : > { %2468 = vmatprep.subr.mxu1 %v2693_v16 }
 0x15e   : > { %2466 = vmatmul.mubr.msk.f32.vlgmr.msra.gmra.mxu1 %vm453_vm3, %v2828_v27 }
 0x15f   : > { %2470 = vmatprep.mubr.msk.f32.mxu1 %vm2694_vm2, %v2693_v16 }
 0x21a   : > { %v525_v29 = vpop.f32.mrf.mxu1 }
 0x21b   : > { %v607_v31 = vmul.f32 0.35355338, %v525_v29 }
 0x21c   : > { %v2462_v32 = vpop.f32.mrf.mxu1 }
 0x21d   : > { %v611_v33 = vsel %vm2836_vm4, %v607_v31, -1e+30 }
 0x21e   : > { %v603_v34 = vpop.f32.mrf.mxu1  ;;  %v613_v35 = vsel %vm453_vm3, %v611_v33, -inf }
 0x21f   : > { %v608_v36 = vmul.f32 0.35355338, %v603_v34  ;;  %614 = vmax.xlane.f32.xlu1 %v613_v35 }
 0x220   : > { %v2467_v37 = vpop.f32.mrf.mxu1 }
 0x221   : > { %v612_v38 = vsel %vm2836_vm4, %v608_v36, -1e+30 }
 0x222   : > { %v616_v39 = vsel %vm453_vm3, %v612_v38, -inf }
 0x223   : > { %617 = vmax.xlane.f32.xlu0 %v616_v39 }
 0x239   : > { %440 = vrot.lane.b32.xlu0 %v438_v41, %s2696_s26 }
 0x2a8   : > { %v615_v46 = vpop.xlane.xlu1 %614 }
 0x2a9   : > { %v619_v47 = vsub.f32 %v611_v33, %v615_v46 }
 0x2ab   : > { %v621_v48 = vmul.f32 1.442695, %v619_v47 }
 0x2ac   : > { %v618_v42 = vpop.xlane.xlu0 %617 }
 0x2ad   : > { %v620_v49 = vsub.f32 %v612_v38, %v618_v42  ;;  %2616 = vpow2.f32 %v621_v48 }
 0x2af   : > { %v623_v50 = vmul.f32 1.442695, %v620_v49 }
 0x2b0   : > { %v441_v43 = vpop.permute.xlu0 %440 }
 0x2b1   : > { %v2848_v44 = vadd.f32 %v441_v43, %v410_v20  ;;  %v2850_v45 = vadd.f32 %v2457_v18, %v441_v43  ;;  %2618 = vpow2.f32 %v623_v50 }
 0x2b3   : > { %713 = vrot.lane.b32.xlu0 %v2850_v45, %s2696_s26  ;;  %636 = vrot.lane.b32.xlu1 %v2848_v44, %s2696_s26 }
 0x2b7   : > { %791 = vrot.lane.b32.xlu0 %v2811_v21, %s2697_s27  ;;  %869 = vrot.lane.b32.xlu1 %v2809_v19, %s2697_s27 }
 0x2ba   : > { %v2617_v51 = vpop.eup %2616 }
 0x2bb   : > { %789 = vrot.lane.b32.xlu0 %v2820_v25, %s2698_s28  ;;  %v625_v52 = vsel %vm453_vm3, %v2617_v51, 0.0 }
 0x2be   : > { %v2619_v53 = vpop.eup %2618 }
 0x2bf   : > { %v628_v54 = vsel %vm453_vm3, %v2619_v53, 0.0 }
 0x2db   : > { %626 = vadd.xlane.f32.xlu1 %v625_v52 }
 0x2df   : > { %629 = vadd.xlane.f32.xlu1 %v628_v54 }
 0x2f0   : > { %867 = vrot.lane.b32.xlu1 %v2828_v27, %s2698_s28 }
 0x325   : > { %v714_v55 = vpop.permute.xlu0 %713  ;;  %v637_v56 = vpop.permute.xlu1 %636 }
 0x326   : > { %2469 = vmatpush3.msra.mxu1 %v637_v56 }
 0x327   : > { %2473 = vmatprep.subr.mxu1 %v2693_v16 }
 0x329   : > { %v792_v57 = vpop.permute.xlu0 %791  ;;  %v870_v59 = vpop.permute.xlu1 %869 }
 0x32a   : > { %2479 = vmatpush3.xpose.msk.msra.mxu0 %vm453_vm3, %v792_v57 }
 0x32b   : > { %2488 = vmatprep.subr.mxu0 %v2693_v16 }
 0x32d   : > { %v790_v58 = vpop.permute.xlu0 %789 }
 0x32e   : > { %2481 = vmatmul.mubr.msk.f32.vlgmr.msra.gmra.mxu0 %vm453_vm3, %v790_v58 }
 0x32f   : > { %2490 = vmatprep.mubr.msk.f32.mxu0 %vm2694_vm2, %v2693_v16 }
 0x364   : > { %v627_v60 = vpop.xlane.xlu1 %626 }
 0x365   : > { %2620 = vrcp.f32 %v627_v60 }
 0x368   : > { %v630_v61 = vpop.xlane.xlu1 %629 }
 0x369   : > { %2622 = vrcp.f32 %v630_v61 }
 0x36c   : > { %v868_v2 = vpop.permute.xlu1 %867 }
 0x372   : > { %v2621_v62 = vpop.eup %2620 }
 0x373   : > { %v633_v63 = vmul.f32 %v2621_v62, %v2617_v51 }
 0x375   : > { %2471 = vmatmul.mubr.msk.f32.vlgmr.msra.gmra.mxu1 %vm453_vm3, %v633_v63 }
 0x376   : > { %v2623_v0 = vpop.eup %2622  ;;  %2474 = vmatpush3.msra.mxu1 %v714_v55  ;;  %2475 = vmatprep.mubr.msk.f32.mxu1 %vm2694_vm2, %v2693_v16 }
 0x377   : > { %2483 = vmatprep.subr.mxu1 %v2693_v16  ;;  %v634_v1 = vmul.f32 %v2623_v0, %v2619_v53 }
 0x379   : > { %2476 = vmatmul.mubr.msk.f32.vlgmr.msra.gmra.mxu1 %vm453_vm3, %v634_v1 }
 0x37a   : > { %2484 = vmatpush3.xpose.msk.msra.mxu1 %vm453_vm3, %v870_v59  ;;  %2485 = vmatprep.mubr.msk.f32.mxu1 %vm2694_vm2, %v2693_v16 }
 0x37b   : > { %2493 = vmatprep.subr.mxu1 %v2693_v16 }
 0x37d   : > { %2486 = vmatmul.mubr.msk.f32.vlgmr.msra.gmra.mxu1 %vm453_vm3, %v868_v2 }
 0x37e   : > { %2495 = vmatprep.mubr.msk.f32.mxu1 %vm2694_vm2, %v2693_v16 }
 0x3ee   : > { %v863_v3 = vpop.f32.mrf.mxu0 }
 0x3ef   : > { %v945_v4 = vmul.f32 0.35355338, %v863_v3 }
 0x3f0   : > { %v2482_v5 = vpop.f32.mrf.mxu0 }
 0x3f1   : > { %v947_v6 = vsel %vm2836_vm4, %v945_v4, -1e+30 }
 0x3f2   : > { %v949_v7 = vsel %vm453_vm3, %v947_v6, -inf }
 0x3f3   : > { %950 = vmax.xlane.f32.xlu0 %v949_v7 }
 0x435   : > { %v2881_v9 = vpop.f32.mrf.mxu1 }
 0x437   : > { %v2472_v12 = vpop.f32.mrf.mxu1 }
 0x439   : > { %v2883_v15 = vpop.f32.mrf.mxu1 }
 0x43b   : > { %v2477_v17 = vpop.f32.mrf.mxu1 }
 0x43d   : > { %v941_v18 = vpop.f32.mrf.mxu1 }
 0x43e   : > { %v946_v20 = vmul.f32 0.35355338, %v941_v18 }
 0x43f   : > { %v2487_v23 = vpop.f32.mrf.mxu1 }
 0x440   : > { %v948_v24 = vsel %vm2836_vm4, %v946_v20, -1e+30 }
 0x441   : > { %v952_v26 = vsel %vm453_vm3, %v948_v24, -inf }
 0x442   : > { %953 = vmax.xlane.f32.xlu1 %v952_v26 }
 0x453   : > { %971 = vrot.lane.b32.xlu1 %v2848_v44, %s2699_s29 }
 0x457   : > { %1125 = vrot.lane.b32.xlu1 %v2811_v21, %s2700_s30 }
 0x45b   : > { %1203 = vrot.lane.b32.xlu1 %v2809_v19, %s2700_s30 }
 0x45f   : > { %1201 = vrot.lane.b32.xlu1 %v2828_v27, %s2701_s8 }
 0x47c   : > { %v951_v28 = vpop.xlane.xlu0 %950 }
 0x47d   : > { %v955_v29 = vsub.f32 %v947_v6, %v951_v28 }
 0x47f   : > { %v957_v31 = vmul.f32 1.442695, %v955_v29 }
 0x481   : > { %2624 = vpow2.f32 %v957_v31 }
 0x48e   : > { %v2625_v32 = vpop.eup %2624 }
 0x48f   : > { %v961_v33 = vsel %vm453_vm3, %v2625_v32, 0.0 }
 0x490   : > { %962 = vadd.xlane.f32.xlu0 %v961_v33 }
 0x4a6   : > { %1047 = vrot.lane.b32.xlu0 %v2850_v45, %s2699_s29 }
 0x4cb   : > { %v954_v34 = vpop.xlane.xlu1 %953 }
 0x4cc   : > { %v956_v35 = vsub.f32 %v948_v24, %v954_v34 }
 0x4ce   : > { %v959_v36 = vmul.f32 1.442695, %v956_v35 }
 0x4cf   : > { %v972_v37 = vpop.permute.xlu1 %971 }
 0x4d0   : > { %2626 = vpow2.f32 %v959_v36  ;;  %2489 = vmatpush3.msra.mxu0 %v972_v37 }
 0x4d1   : > { %2498 = vmatprep.subr.mxu0 %v2693_v16 }
 0x4d3   : > { %v1126_v46 = vpop.permute.xlu1 %1125 }
 0x4d7   : > { %v1204_v50 = vpop.permute.xlu1 %1203 }
 0x4db   : > { %v1202_v52 = vpop.permute.xlu1 %1201 }
 0x4dd   : > { %v2627_v38 = vpop.eup %2626 }
 0x4de   : > { %v964_v39 = vsel %vm453_vm3, %v2627_v38, 0.0 }
 0x4df   : > { %965 = vadd.xlane.f32.xlu0 %v964_v39 }
 0x4f5   : > { %1123 = vrot.lane.b32.xlu0 %v2820_v25, %s2701_s8 }
 0x519   : > { %v963_v40 = vpop.xlane.xlu0 %962 }
 0x51a   : > { %2628 = vrcp.f32 %v963_v40 }
 0x51d   : > { %v1048_v41 = vpop.permute.xlu0 %1047 }
 0x51e   : > { %2494 = vmatpush3.msra.mxu1 %v1048_v41 }
 0x51f   : > { %2503 = vmatprep.subr.mxu1 %v2693_v16 }
 0x527   : > { %v2629_v42 = vpop.eup %2628 }
 0x528   : > { %v969_v43 = vmul.f32 %v2629_v42, %v2625_v32 }
 0x52a   : > { %2491 = vmatmul.mubr.msk.f32.vlgmr.msra.gmra.mxu0 %vm453_vm3, %v969_v43 }
 0x52b   : > { %2499 = vmatpush3.xpose.msk.msra.mxu0 %vm453_vm3, %v1126_v46  ;;  %2500 = vmatprep.mubr.msk.f32.mxu0 %vm2694_vm2, %v2693_v16 }
 0x52c   : > { %2508 = vmatprep.subr.mxu0 %v2693_v16 }
 0x568   : > { %v966_v47 = vpop.xlane.xlu0 %965 }
 0x569   : > { %2630 = vrcp.f32 %v966_v47 }
 0x56c   : > { %v1124_v48 = vpop.permute.xlu0 %1123 }
 0x56d   : > { %2501 = vmatmul.mubr.msk.f32.vlgmr.msra.gmra.mxu0 %vm453_vm3, %v1124_v48 }
 0x56e   : > { %2510 = vmatprep.mubr.msk.f32.mxu0 %vm2694_vm2, %v2693_v16 }
 0x576   : > { %v2631_v49 = vpop.eup %2630 }
 0x577   : > { %v970_v51 = vmul.f32 %v2631_v49, %v2627_v38 }
 0x579   : > { %2496 = vmatmul.mubr.msk.f32.vlgmr.msra.gmra.mxu1 %vm453_vm3, %v970_v51 }
 0x57a   : > { %2504 = vmatpush3.xpose.msk.msra.mxu1 %vm453_vm3, %v1204_v50  ;;  %2505 = vmatprep.mubr.msk.f32.mxu1 %vm2694_vm2, %v2693_v16 }
 0x57b   : > { %2513 = vmatprep.subr.mxu1 %v2693_v16 }
 0x57d   : > { %2506 = vmatmul.mubr.msk.f32.vlgmr.msra.gmra.mxu1 %vm453_vm3, %v1202_v52 }
 0x57e   : > { %2515 = vmatprep.mubr.msk.f32.mxu1 %vm2694_vm2, %v2693_v16 }
 0x5ea   : > { %v2914_v53 = vpop.f32.mrf.mxu0 }
 0x5ec   : > { %v2492_v54 = vpop.f32.mrf.mxu0 }
 0x62d   : > { %v1197_v55 = vpop.f32.mrf.mxu0 }
 0x62e   : > { %v1279_v56 = vmul.f32 0.35355338, %v1197_v55 }
 0x62f   : > { %v2502_v57 = vpop.f32.mrf.mxu0 }
 0x630   : > { %v1281_v58 = vsel %vm2836_vm4, %v1279_v56, -1e+30 }
 0x631   : > { %v1283_v59 = vsel %vm453_vm3, %v1281_v58, -inf }
 0x632   : > { %1284 = vmax.xlane.f32.xlu0 %v1283_v59 }
 0x639   : > { %v2919_v60 = vpop.f32.mrf.mxu1 }
 0x63b   : > { %v2497_v61 = vpop.f32.mrf.mxu1 }
 0x63d   : > { %v1275_v62 = vpop.f32.mrf.mxu1 }
 0x63e   : > { %v1280_v63 = vmul.f32 0.35355338, %v1275_v62 }
 0x63f   : > { %v2507_v0 = vpop.f32.mrf.mxu1 }
 0x640   : > { %v1282_v1 = vsel %vm2836_vm4, %v1280_v63, -1e+30 }
 0x641   : > { %v1286_v2 = vsel %vm453_vm3, %v1282_v1, -inf }
 0x642   : > { %1287 = vmax.xlane.f32.xlu1 %v1286_v2  ;;  %v326_v2 = vld [vmem:[%s2769_s12 + $0x18] sm:$0xff] }
 0x653   : > { %1305 = vrot.lane.b32.xlu1 %v2848_v44, %s2702_s9 }
 0x657   : > { %1459 = vrot.lane.b32.xlu1 %v2811_v21, %s2703_s10 }
 0x65b   : > { %1537 = vrot.lane.b32.xlu1 %v2809_v19, %s2703_s10 }
 0x65f   : > { %1535 = vrot.lane.b32.xlu1 %v2828_v27, %s2704_s11 }
 0x6bb   : > { %v1285_v3 = vpop.xlane.xlu0 %1284 }
 0x6bc   : > { %v1289_v4 = vsub.f32 %v1281_v58, %v1285_v3  ;;  %v325_v3 = vld [vmem:[%s2769_s12 + $0x10] sm:$0xff] }
 0x6be   : > { %v1291_v5 = vmul.f32 1.442695, %v1289_v4  ;;  %v323_v4 = vld [vmem:[%s2769_s12] sm:$0xff] }
 0x6c0   : > { %2632 = vpow2.f32 %v1291_v5 }
 0x6cb   : > { %v1288_v6 = vpop.xlane.xlu1 %1287 }
 0x6cc   : > { %v1290_v21 = vsub.f32 %v1282_v1, %v1288_v6 }
 0x6cd   : > { %v2633_v7 = vpop.eup %2632 }
 0x6ce   : > { %v1295_v12 = vsel %vm453_vm3, %v2633_v7, 0.0  ;;  %v1293_v19 = vmul.f32 1.442695, %v1290_v21 }
 0x6cf   : > { %1296 = vadd.xlane.f32.xlu0 %v1295_v12  ;;  %v1306_v17 = vpop.permute.xlu1 %1305 }
 0x6d0   : > { %2509 = vmatpush3.msra.mxu0 %v1306_v17  ;;  %2634 = vpow2.f32 %v1293_v19 }
 0x6d1   : > { %2518 = vmatprep.subr.mxu0 %v2693_v16 }
 0x6d3   : > { %v1460_v28 = vpop.permute.xlu1 %1459 }
 0x6d7   : > { %v1538_v32 = vpop.permute.xlu1 %1537 }
 0x6db   : > { %v1536_v34 = vpop.permute.xlu1 %1535 }
 0x6dd   : > { %v2635_v18 = vpop.eup %2634 }
 0x6de   : > { %v1298_v27 = vsel %vm453_vm3, %v2635_v18, 0.0 }
 0x6e5   : > { %1381 = vrot.lane.b32.xlu0 %v2850_v45, %s2702_s9 }
 0x704   : > { %1299 = vadd.xlane.f32.xlu0 %v1298_v27 }
 0x71a   : > { %1457 = vrot.lane.b32.xlu0 %v2820_v25, %s2704_s11 }
 0x758   : > { %v1297_v20 = vpop.xlane.xlu0 %1296 }
 0x759   : > { %2636 = vrcp.f32 %v1297_v20 }
 0x75c   : > { %v1382_v23 = vpop.permute.xlu0 %1381 }
 0x75d   : > { %2514 = vmatpush3.msra.mxu1 %v1382_v23 }
 0x75e   : > { %2523 = vmatprep.subr.mxu1 %v2693_v16 }
 0x766   : > { %v2637_v24 = vpop.eup %2636 }
 0x767   : > { %v1303_v26 = vmul.f32 %v2637_v24, %v2633_v7 }
 0x769   : > { %2511 = vmatmul.mubr.msk.f32.vlgmr.msra.gmra.mxu0 %vm453_vm3, %v1303_v26 }
 0x76a   : > { %2519 = vmatpush3.xpose.msk.msra.mxu0 %vm453_vm3, %v1460_v28  ;;  %2520 = vmatprep.mubr.msk.f32.mxu0 %vm2694_vm2, %v2693_v16 }
 0x76b   : > { %2528 = vmatprep.subr.mxu0 %v2693_v16 }
 0x78d   : > { %v1300_v29 = vpop.xlane.xlu0 %1299 }
 0x78e   : > { %2638 = vrcp.f32 %v1300_v29 }
 0x791   : > { %v1458_v25 = vpop.permute.xlu0 %1457 }
 0x792   : > { %2521 = vmatmul.mubr.msk.f32.vlgmr.msra.gmra.mxu0 %vm453_vm3, %v1458_v25 }
 0x793   : > { %2530 = vmatprep.mubr.msk.f32.mxu0 %vm2694_vm2, %v2693_v16 }
 0x79b   : > { %v2639_v31 = vpop.eup %2638 }
 0x79c   : > { %v1304_v33 = vmul.f32 %v2639_v31, %v2635_v18  ;;  %v1825_v31 = vsub.s32 3, %v2790_v10 }
 0x79e   : > { %2516 = vmatmul.mubr.msk.f32.vlgmr.msra.gmra.mxu1 %vm453_vm3, %v1304_v33 }
 0x79f   : > { %2524 = vmatpush3.xpose.msk.msra.mxu1 %vm453_vm3, %v1538_v32  ;;  %2525 = vmatprep.mubr.msk.f32.mxu1 %vm2694_vm2, %v2693_v16 }
 0x7a0   : > { %2533 = vmatprep.subr.mxu1 %v2693_v16 }
 0x7a2   : > { %2526 = vmatmul.mubr.msk.f32.vlgmr.msra.gmra.mxu1 %vm453_vm3, %v1536_v34 }
 0x7a3   : > { %2535 = vmatprep.mubr.msk.f32.mxu1 %vm2694_vm2, %v2693_v16 }
 0x829   : > { %v1377_v35 = vpop.f32.mrf.mxu0 }
 0x82b   : > { %v2512_v36 = vpop.f32.mrf.mxu0 }
 0x852   : > { %v1531_v37 = vpop.f32.mrf.mxu0 }
 0x853   : > { %v1613_v38 = vmul.f32 0.35355338, %v1531_v37 }
 0x854   : > { %v2522_v39 = vpop.f32.mrf.mxu0 }
 0x855   : > { %v1615_v40 = vsel %vm2836_vm4, %v1613_v38, -1e+30 }
 0x856   : > { %v1617_v41 = vsel %vm453_vm3, %v1615_v40, -inf }
 0x857   : > { %1618 = vmax.xlane.f32.xlu0 %v1617_v41 }
 0x85e   : > { %v1453_v42 = vpop.f32.mrf.mxu1 }
 0x860   : > { %v2517_v43 = vpop.f32.mrf.mxu1 }
 0x862   : > { %v1609_v46 = vpop.f32.mrf.mxu1 }
 0x863   : > { %v1614_v47 = vmul.f32 0.35355338, %v1609_v46 }
 0x864   : > { %v2527_v48 = vpop.f32.mrf.mxu1 }
 0x865   : > { %v1616_v49 = vsel %vm2836_vm4, %v1614_v47, -1e+30 }
 0x866   : > { %v1620_v16 = vsel %vm453_vm3, %v1616_v49, -inf }
 0x867   : > { %1621 = vmax.xlane.f32.xlu1 %v1620_v16  ;;  %v329_v16 = vld [vmem:[%s2769_s12 + $0x30] sm:$0xff] }
 0x878   : > { %1639 = vrot.lane.b32.xlu1 %v2848_v44, %s2705_s13 }
 0x87c   : > { %1793 = vrot.lane.b32.xlu1 %v2914_v53, %s2706_s14 }
 0x880   : > { %1795 = vrot.lane.b32.xlu1 %v2919_v60, %s2706_s14 }
 0x884   : > { %1803 = vrot.lane.b32.xlu1 %v1453_v42, %s2707_s16 }
 0x8e0   : > { %v1619_v50 = vpop.xlane.xlu0 %1618 }
 0x8e1   : > { %v1623_v51 = vsub.f32 %v1615_v40, %v1619_v50  ;;  %v328_v50 = vld [vmem:[%s2769_s12 + $0x28] sm:$0xff] }
 0x8e3   : > { %v1625_v52 = vmul.f32 1.442695, %v1623_v51  ;;  %v327_v51 = vld [vmem:[%s2769_s12 + $0x20] sm:$0xff] }
 0x8e5   : > { %2640 = vpow2.f32 %v1625_v52 }
 0x8f0   : > { %v1622_v30 = vpop.xlane.xlu1 %1621 }
 0x8f1   : > { %v1624_v54 = vsub.f32 %v1616_v49, %v1622_v30  ;;  %v330_v49 = vld [vmem:[%s2769_s12 + $0x38] sm:$0xff] }
 0x8f2   : > { %v2641_v55 = vpop.eup %2640 }
 0x8f3   : > { %v1627_v56 = vmul.f32 1.442695, %v1624_v54  ;;  %v1629_v57 = vsel %vm453_vm3, %v2641_v55, 0.0 }
 0x8f4   : > { %1630 = vadd.xlane.f32.xlu0 %v1629_v57  ;;  %v1640_v44 = vpop.permute.xlu1 %1639 }
 0x8f5   : > { %2642 = vpow2.f32 %v1627_v56  ;;  %2529 = vmatpush3.msra.mxu0 %v1640_v44  ;;  %v1939_v44 = vsub.s32 4, %v2790_v10 }
 0x8f6   : > { %2538 = vmatprep.subr.mxu0 %v326_v2 }
 0x8f8   : > { %v1794_v17 = vpop.permute.xlu1 %1793 }
 0x8f9   : > { %v1815_v19 = vsel %vm453_vm3, %v2881_v9, %v1794_v17  ;;  %v1826_v9 = vrot.slane %v2793_v11, %v1825_v31 }
 0x8fc   : > { %v1796_v23 = vpop.permute.xlu1 %1795 }
 0x8fd   : > { %v1816_v26 = vsel %vm453_vm3, %v2883_v15, %v1796_v23  ;;  %v2038_v23 = vsub.s32 7, %v2790_v10 }
 0x900   : > { %v1804_v24 = vpop.permute.xlu1 %1803 }
 0x901   : > { %v1819_v28 = vsel %vm1817_vm6, %v1816_v26, %v1804_v24  ;;  %v2039_v24 = vrot.slane %v2793_v11, %v2038_v23 }
 0x902   : > { %v2643_v53 = vpop.eup %2642 }
 0x903   : > { %v1632_v58 = vsel %vm453_vm3, %v2643_v53, 0.0 }
 0x904   : > { %1633 = vadd.xlane.f32.xlu0 %v1632_v58  ;;  %v1940_v58 = vrot.slane %v2793_v11, %v1939_v44 }
 0x91a   : > { %1715 = vrot.lane.b32.xlu0 %v2850_v45, %s2705_s13  ;;  %v324_v45 = vld [vmem:[%s2769_s12 + $0x8] sm:$0xff] }
 0x91e   : > { %1801 = vrot.lane.b32.xlu0 %v1377_v35, %s2707_s16 }
 0x97d   : > { %v1631_v59 = vpop.xlane.xlu0 %1630 }
 0x97e   : > { %2644 = vrcp.f32 %v1631_v59 }
 0x98b   : > { %v2645_v60 = vpop.eup %2644 }
 0x98c   : > { %v1637_v61 = vmul.f32 %v2645_v60, %v2641_v55 }
 0x98d   : > { %v1634_v62 = vpop.xlane.xlu0 %1633 }
 0x98e   : > { %2646 = vrcp.f32 %v1634_v62  ;;  %2531 = vmatmul.mubr.msk.f32.vlgmr.msra.gmra.mxu0 %vm453_vm3, %v1637_v61 }
 0x98f   : > { %2539 = vmatpush3.msra.mxu0 %v326_v2 }
 0x990   : > { %2540 = vmatprep.subr.mxu0 %v325_v3 }
 0x991   : > { %v1716_v63 = vpop.permute.xlu0 %1715  ;;  %2541 = vmatpush3.msra.mxu0 %v325_v3 }
 0x992   : > { %2534 = vmatpush3.msra.mxu1 %v1716_v63  ;;  %2542 = vmatprep.subr.mxu0 %v324_v45 }
 0x993   : > { %2543 = vmatpush3.msra.mxu0 %v324_v45  ;;  %2549 = vmatprep.subr.mxu1 %v330_v49  ;;  %v334_v45 = vld [vmem:[%s2769_s12 + $0x58] sm:$0xff] }
 0x994   : > { %2544 = vmatprep.subr.mxu0 %v323_v4 }
 0x995   : > { %2545 = vmatpush3.msra.mxu0 %v323_v4  ;;  %v1802_v21 = vpop.permute.xlu0 %1801  ;;  %v333_v4 = vld [vmem:[%s2769_s12 + $0x50] sm:$0xff] }
 0x996   : > { %v1818_v18 = vsel %vm1817_vm6, %v1815_v19, %v1802_v21  ;;  %2560 = vmatprep.subr.mxu0 %v334_v45 }
 0x99b   : > { %v2647_v0 = vpop.eup %2646 }
 0x99c   : > { %v1638_v1 = vmul.f32 %v2647_v0, %v2643_v53  ;;  %v1945_v53 = vsub.s32 5, %v2790_v10 }
 0x99e   : > { %2536 = vmatmul.mubr.msk.f32.vlgmr.msra.gmra.mxu1 %vm453_vm3, %v1638_v1  ;;  %v1946_v61 = vrot.slane %v2793_v11, %v1945_v53 }
 0x99f   : > { %2550 = vmatpush3.msra.mxu1 %v330_v49 }
 0x9a0   : > { %2551 = vmatprep.subr.mxu1 %v329_v16 }
 0x9a1   : > { %2552 = vmatpush3.msra.mxu1 %v329_v16 }
 0x9a2   : > { %2553 = vmatprep.subr.mxu1 %v328_v50 }
 0x9a3   : > { %2554 = vmatpush3.msra.mxu1 %v328_v50 }
 0x9a4   : > { %2555 = vmatprep.subr.mxu1 %v327_v51 }
 0x9a5   : > { %2556 = vmatpush3.msra.mxu1 %v327_v51 }
 0xa4e   : > { %v1711_v5 = vpop.f32.mrf.mxu0 }
 0xa4f   : > { %1809 = vrot.lane.b32.xlu0 %v1711_v5, %s2708_s17  ;;  %v332_v5 = vld [vmem:[%s2769_s12 + $0x48] sm:$0xff] }
 0xa50   : > { %v2532_v6 = vpop.f32.mrf.mxu0 }
 0xa51   : > { %v331_v6 = vld [vmem:[%s2769_s12 + $0x40] sm:$0xff] }
 0xa5e   : > { %v1787_v7 = vpop.f32.mrf.mxu1 }
 0xa5f   : > { %1811 = vrot.lane.b32.xlu1 %v1787_v7, %s2708_s17  ;;  %v1951_v7 = vsub.s32 6, %v2790_v10 }
 0xa60   : > { %v2537_v12 = vpop.f32.mrf.mxu1 }
 0xa61   : > { %v1952_v12 = vrot.slane %v2793_v11, %v1951_v7 }
 0xac1   : > { %v1810_v27 = vpop.permute.xlu0 %1809 }
 0xac2   : > { %v1821_v20 = vsel %vm1820_vm5, %v1818_v18, %v1810_v27 }
 0xac3   : > { %2546 = vmatprep.mubr.msk.f32.mxu0 %vm337_vm1, %v1821_v20 }
 0xad1   : > { %v1812_v29 = vpop.permute.xlu1 %1811 }
 0xad2   : > { %v1822_v25 = vsel %vm1820_vm5, %v1819_v28, %v1812_v29 }
 0xad3   : > { %2547 = vmatmul.mubr.msk.f32.vlgmr.msra.gmra.mxu0 %vm337_vm1, %v1822_v25 }
 0xad4   : > { %2561 = vmatpush3.msra.mxu0 %v334_v45 }
 0xad5   : > { %2562 = vmatprep.subr.mxu0 %v333_v4 }
 0xad6   : > { %2563 = vmatpush3.msra.mxu0 %v333_v4 }
 0xad7   : > { %2564 = vmatprep.subr.mxu0 %v332_v5 }
 0xad8   : > { %2565 = vmatpush3.msra.mxu0 %v332_v5 }
 0xad9   : > { %2566 = vmatprep.subr.mxu0 %v331_v6 }
 0xada   : > { %2567 = vmatpush3.msra.mxu0 %v331_v6 }
 0xb93   : > { %v2548_v32 = vpop.f32.mrf.mxu0 }
 0xb94   : > { %v1905_v33 = vadd.f32 %v2548_v32, %v1826_v9 }
 0xb95   : > { %v1899_v34 = vpop.f32.mrf.mxu0 }
 0xb96   : > { %v1900_v35 = vadd.f32 %v1899_v34, %v1826_v9  ;;  %v1909_v36 = vadd.f32 %v1905_v33, %v2796_v14 }
 0xb98   : > { %v1913_v37 = vsel %vm337_vm1, %v1909_v36, 0.0  ;;  %v1908_v38 = vadd.f32 %v1900_v35, %v2786_v8 }
 0xb99   : > { %1914 = vadd.xlane.f32.xlu1 %v1913_v37 }
 0xb9a   : > { %v1910_v15 = vsel %vm337_vm1, %v1908_v38, 0.0 }
 0xb9b   : > { %1911 = vadd.xlane.f32.xlu0 %v1910_v15 }
 0xc22   : > { %v1915_v39 = vpop.xlane.xlu1 %1914 }
 0xc23   : > { %v1918_v40 = vmul.f32 0.03125, %v1915_v39 }
 0xc24   : > { %v1912_v41 = vpop.xlane.xlu0 %1911 }
 0xc25   : > { %v1917_v42 = vmul.f32 0.03125, %v1912_v41  ;;  %v1920_v43 = vsub.f32 %v1909_v36, %v1918_v40 }
 0xc27   : > { %v1919_v46 = vsub.f32 %v1908_v38, %v1917_v42  ;;  %v1922_v48 = vmul.f32 %v1920_v43, %v1920_v43 }
 0xc29   : > { %v1921_v47 = vmul.f32 %v1919_v46, %v1919_v46  ;;  %v1926_v8 = vsel %vm337_vm1, %v1922_v48, 0.0 }
 0xc2b   : > { %v1923_v14 = vsel %vm337_vm1, %v1921_v47, 0.0 }
 0xc2c   : > { %1924 = vadd.xlane.f32.xlu0 %v1923_v14 }
 0xc30   : > { %1927 = vadd.xlane.f32.xlu0 %v1926_v8  ;;  %v336_v8 = vld [vmem:[%s2774_s15 + $0x8] sm:$0x3] }
 0xc31   : > { %v2152_v49 = vrot.slane %v336_v8, %v421_v22  ;;  %v2158_v50 = vrot.slane %v336_v8, %v427_v13 }
 0xcb5   : > { %v1925_v52 = vpop.xlane.xlu0 %1924 }
 0xcb6   : > { %v1929_v30 = vmul.f32 0.03125, %v1925_v52 }
 0xcb8   : > { %v1931_v54 = vadd.f32 1e-05, %v1929_v30 }
 0xcb9   : > { %v1928_v55 = vpop.xlane.xlu0 %1927 }
 0xcba   : > { %2648 = vrsqrt.f32 %v1931_v54  ;;  %v1930_v56 = vmul.f32 0.03125, %v1928_v55 }
 0xcbc   : > { %v1932_v57 = vadd.f32 1e-05, %v1930_v56 }
 0xcbe   : > { %2650 = vrsqrt.f32 %v1932_v57 }
 0xcc7   : > { %v2649_v59 = vpop.eup %2648 }
 0xcc8   : > { %v1935_v60 = vmul.f32 %v2649_v59, %v1919_v46 }
 0xcca   : > { %v1941_v62 = vmul.f32 %v1940_v58, %v1935_v60 }
 0xccb   : > { %v2651_v63 = vpop.eup %2650 }
 0xccc   : > { %v1936_v0 = vmul.f32 %v2651_v63, %v1920_v43  ;;  %v1947_v1 = vadd.f32 %v1946_v61, %v1941_v62 }
 0xcce   : > { %v1942_v2 = vmul.f32 %v1940_v58, %v1936_v0  ;;  %2557 = vmatprep.mubr.msk.f32.mxu1 %vm337_vm1, %v1947_v1 }
 0xcd0   : > { %v1948_v3 = vadd.f32 %v1946_v61, %v1942_v2 }
 0xcd2   : > { %2558 = vmatmul.mubr.msk.f32.vlgmr.msra.gmra.mxu1 %vm337_vm1, %v1948_v3 }
 0xd92   : > { %v2559_v17 = vpop.f32.mrf.mxu1 }
 0xd93   : > { %v2031_v21 = vadd.f32 %v2559_v17, %v1952_v12 }
 0xd94   : > { %v2025_v19 = vpop.f32.mrf.mxu1 }
 0xd95   : > { %v2026_v18 = vadd.f32 %v2025_v19, %v1952_v12  ;;  %v2035_v20 = vmax.f32 %v2031_v21, 0.0 }
 0xd97   : > { %v2034_v27 = vmax.f32 %v2026_v18, 0.0 }
 0xd99   : > { %2568 = vmatprep.mubr.msk.f32.mxu0 %vm337_vm1, %v2034_v27 }
 0xd9a   : > { %2569 = vmatmul.mubr.msk.f32.vlgmr.msra.gmra.mxu0 %vm337_vm1, %v2035_v20 }
 0xe5a   : > { %v2570_v26 = vpop.f32.mrf.mxu0 }
 0xe5b   : > { %v2118_v28 = vadd.f32 %v2570_v26, %v2039_v24 }
 0xe5c   : > { %v2112_v29 = vpop.f32.mrf.mxu0 }
 0xe5d   : > { %v2113_v25 = vadd.f32 %v2112_v29, %v2039_v24  ;;  %v2122_v31 = vadd.f32 %v2118_v28, %v2035_v20 }
 0xe5f   : > { %v2126_v9 = vsel %vm337_vm1, %v2122_v31, 0.0  ;;  %v2121_v32 = vadd.f32 %v2113_v25, %v2034_v27 }
 0xe60   : > { %2127 = vadd.xlane.f32.xlu0 %v2126_v9 }
 0xe61   : > { %v2123_v33 = vsel %vm337_vm1, %v2121_v32, 0.0 }
 0xe62   : > { %2124 = vadd.xlane.f32.xlu1 %v2123_v33 }
 0xee9   : > { %v2128_v34 = vpop.xlane.xlu0 %2127 }
 0xeea   : > { %v2130_v35 = vmul.f32 0.03125, %v2128_v34 }
 0xeeb   : > { %v2125_v36 = vpop.xlane.xlu1 %2124 }
 0xeec   : > { %v2132_v37 = vsub.f32 %v2122_v31, %v2130_v35  ;;  %v2129_v38 = vmul.f32 0.03125, %v2125_v36 }
 0xeee   : > { %v2131_v15 = vsub.f32 %v2121_v32, %v2129_v38  ;;  %v2134_v11 = vmul.f32 %v2132_v37, %v2132_v37 }
 0xef0   : > { %v2138_v39 = vsel %vm337_vm1, %v2134_v11, 0.0  ;;  %v2133_v40 = vmul.f32 %v2131_v15, %v2131_v15 }
 0xef1   : > { %2139 = vadd.xlane.f32.xlu0 %v2138_v39 }
 0xef2   : > { %v2135_v41 = vsel %vm337_vm1, %v2133_v40, 0.0 }
 0xef3   : > { %2136 = vadd.xlane.f32.xlu1 %v2135_v41 }
 0xf7a   : > { %v2140_v42 = vpop.xlane.xlu0 %2139 }
 0xf7b   : > { %v2142_v43 = vmul.f32 0.03125, %v2140_v42 }
 0xf7c   : > { %v2137_v46 = vpop.xlane.xlu1 %2136 }
 0xf7d   : > { %v2144_v47 = vadd.f32 1e-05, %v2142_v43  ;;  %v2141_v14 = vmul.f32 0.03125, %v2137_v46 }
 0xf7f   : > { %2652 = vrsqrt.f32 %v2144_v47  ;;  %v2143_v48 = vadd.f32 1e-05, %v2141_v14 }
 0xf81   : > { %2654 = vrsqrt.f32 %v2143_v48 }
 0xf8c   : > { %v2653_v16 = vpop.eup %2652 }
 0xf8d   : > { %v2148_v51 = vmul.f32 %v2653_v16, %v2132_v37 }
 0xf8e   : > { %v2655_v52 = vpop.eup %2654 }
 0xf8f   : > { %v2154_v30 = vmul.f32 %v2152_v49, %v2148_v51  ;;  %v2147_v54 = vmul.f32 %v2655_v52, %v2131_v15 }
 0xf91   : > { %v2160_v55 = vadd.f32 %v2158_v50, %v2154_v30  ;;  %v2153_v56 = vmul.f32 %v2152_v49, %v2147_v54  ;;  %2166 = sbr.rel (%p2375_p5) target bundleno = 4197 (0x1065), region = 56 }
 0xf93   : > { %2162 = vst.msk [vmem:[#allocation2 + $0x8] sm:$0xff] %vm337_vm1, %v2160_v55  ;;  %v2159_v57 = vadd.f32 %v2158_v50, %v2153_v56 }
 0xf95   : > { %2161 = vst.msk [vmem:[#allocation2] sm:$0xff] %vm337_vm1, %v2159_v57 }
 0xf96   : > { %v2170_v22 = vld [vmem:[%s3051_s2 + $0x18] sm:$0xff]  ;;  %v2169_v10 = vld [vmem:[%s3051_s2 + $0x10] sm:$0xff]  ;;  %2579 = vmatprep.mubr.msk.f32.mxu0 %vm337_vm1, %v2159_v57  ;;  %v2168_v13 = vld [vmem:[%s3051_s2 + $0x8] sm:$0xff] }
 0xf97   : > { %2571 = vmatprep.subr.mxu0 %v2170_v22  ;;  %v2167_v44 = vld [vmem:[%s3051_s2] sm:$0xff] }
 0xf98   : > { %2572 = vmatpush3.msra.mxu0 %v2170_v22  ;;  %v2376_v53 = vld [vmem:[%s3052_s3] ss:$0 sm:$0xff] }
 0xf99   : > { %2573 = vmatprep.subr.mxu0 %v2169_v10 }
 0xf9a   : > { %2574 = vmatpush3.msra.mxu0 %v2169_v10 }
 0xf9b   : > { %2575 = vmatprep.subr.mxu0 %v2168_v13 }
 0xf9c   : > { %2576 = vmatpush3.msra.mxu0 %v2168_v13 }
 0xf9d   : > { %2577 = vmatprep.subr.mxu0 %v2167_v44 }
 0xf9e   : > { %2578 = vmatpush3.msra.mxu0 %v2167_v44 }
 0xf9f   : > { %2580 = vmatmul.mubr.msk.f32.vlgmr.msra.gmra.mxu0 %vm337_vm1, %v2160_v55 }
0x105f   : > { %v2581_v58 = vpop.f32.mrf.mxu0 }
0x1060   : > { %v2256_v59 = vadd.f32 %v2581_v58, %v2376_v53 }
0x1061   : > { %v2250_v60 = vpop.f32.mrf.mxu0 }
0x1062   : > { %2260 = vst [vmem:[#allocation3 + $0x8] sm:$0xff] %v2256_v59  ;;  %v2251_v61 = vadd.f32 %v2376_v53, %v2250_v60 }
0x1064   : > { %2259 = vst [vmem:[#allocation3] sm:$0xff] %v2251_v61 }
0x1065 PF: > { %p2587_p6 = scmp.eq.s32.totalorder %s2757_s25, 1  ;;  %s2709_s28 = smov [#allocation3]  }
0x1066   : > { %s2267_s29 = sshll.u32 %s2709_s28, 4  ;;  %s2268_s29 = int_to_ptr.vmem [resolvable:$true] %s2267_s29 }
0x1067   : > { %s2656_s30 = scalar_lea.vmem %s2268_s29, 256  ;;  %p2663_p10 = scmp.lt.s32.totalorder %s2268_s29, %s2268_s29 }
0x1068   : > { %p2657_p7 = scmp.ne.s32.totalorder %s2268_s29, %s2656_s30  ;;  %p2664_p11 = scmp.lt.s32.totalorder %s2656_s30, %s2656_s30 }
0x106a   : > { %p2658_p8 = pnand %p2657_p7, %p2587_p6  ;;  %p2665_p12 = por %p2664_p11, %p2663_p10 }
0x106c   : > { %p2659_p9 = pneg %p2658_p8 }
0x106e   : > { %p2666_p13 = pnand %p2665_p12, %p2659_p9 }
0x1070   : > { %2669 = shalt.err (!%p2666_p13)
}
0x1071   : > { %s2710_s8 = smov 128  }
0x1072   : > { %2584 = dma.vmem_to_hbm [thread:$0]  (%p2587_p6), %s2268_s29, 256, %s3056_s7, [#allocation4], %s2710_s8, %s2710_s8, %s2706_s14  }
0x1073   : > { %2685 = dma.done.wait (%p2587_p6), [#allocation4], 256  }
0x1074   : > { %2687 = vsyncadd (%p2587_p6), [#allocation4], 4294967040 }
0x1075 PF: > { %s18_s24 = sadd.s32 1, %s2690_s24  }
0x1076   : > { %p15_p0 = scmp.ge.s32.totalorder %s18_s24, 4  }
0x1078   :  { %17 = sbr.rel (!%p15_p0) target bundleno = 1 (0x1), region = 89 }
0x107d   :  { %2283 = vsyncpa [#allocation4], 1 }
0x107e   :  { %2285 = vsyncpa [#allocation4 + $0x1], 1 }

</bundles_post_ra>
